<compile_context>
chip_gen: v7x
topology: tpu7x:2x2x1
jax: 0.10.0
libtpu: 0.0.40
codegen_flags: <defaults>
</compile_context>

<pallas_src>
import math

import jax
import jax.numpy as jnp
from jax import lax
from jax.experimental import pallas as pl
from jax.experimental.pallas import tpu as pltpu


def _round_up(x, m):
    return ((x + m - 1) // m) * m


def _pick_tile(n, target, align):
    """Largest multiple of `align` <= min(target, n) dividing n (n is pre-padded
    to a multiple of 128, so a valid divisor >= align always exists)."""
    t = (min(target, n) // align) * align
    while t >= align:
        if n % t == 0:
            return t
        t -= align
    return n


# ----------------------------------------------------------------------------
# Kernel 1: fused LorentzLinear projections  x -> h -> (qm || k)
# ----------------------------------------------------------------------------
def _lorentz_proj_kernel(scales_ref, x_ref, wh_ref, bh_ref, wqk_ref, bqk_ref,
                         h_ref, qm_ref, k_ref):
    tm = x_ref.shape[0]
    fout = h_ref.shape[1]
    is_col0 = lax.broadcasted_iota(jnp.int32, (tm, fout), 1) == 0

    def lorentz_rescale(y, exp_scale, negate_time):
        # y: [tm, fout] f32 = x @ W + b.  Mirrors LorentzLinear.forward tail.
        col0 = y[:, 0:1]
        time = jax.nn.sigmoid(col0) * exp_scale + 1.1
        # space-norm computed by zeroing col 0 (avoids sum(y^2)-col0^2 cancel)
        y_space = jnp.where(is_col0, 0.0, y)
        sq_rest = jnp.maximum(
            jnp.sum(y_space * y_space, axis=-1, keepdims=True), 1e-8)
        s = jnp.sqrt(time * time - 1.0) * lax.rsqrt(sq_rest)   # rsqrt -> EUP
        t0 = -time if negate_time else time
        return jnp.where(is_col0, t0, y * s)

    # h = LorentzLinear(x)            (x, weights already bf16; f32 accumulate)
    yh = jnp.dot(x_ref[...], wh_ref[...],
                 preferred_element_type=jnp.float32) + bh_ref[...]
    h = lorentz_rescale(yh, scales_ref[0], False)
    h_bf = h.astype(jnp.bfloat16)
    h_ref[...] = h_bf

    # q and k in one matmul against the packed (fout, 2*fout) weight.
    yqk = jnp.dot(h_bf, wqk_ref[...],
                  preferred_element_type=jnp.float32) + bqk_ref[...]
    # query: fold manifold.cinner's time negation into the stored q (-> qm)
    qm_ref[...] = lorentz_rescale(yqk[:, :fout], scales_ref[1], True
                                  ).astype(jnp.bfloat16)
    k_ref[...] = lorentz_rescale(yqk[:, fout:], scales_ref[2], False
                                 ).astype(jnp.bfloat16)


def _fused_projection(x_bf16, prepped, *, block_rows=256):
    n, fin = x_bf16.shape
    fout = prepped["wh"].shape[1]

    tm = _pick_tile(n, block_rows, 32)
    grid = (n // tm,)

    row_in = pl.BlockSpec((tm, fin), lambda i: (i, 0))
    row_out = pl.BlockSpec((tm, fout), lambda i: (i, 0))
    out_shape = tuple(jax.ShapeDtypeStruct((n, fout), jnp.bfloat16)
                      for _ in range(3))

    return pl.pallas_call(
        _lorentz_proj_kernel,
        grid=grid,
        in_specs=[
            pl.BlockSpec(memory_space=pltpu.MemorySpace.SMEM),      # scales (3,)
            row_in,                                                 # x rows (bf16)
            pl.BlockSpec((fin, fout), lambda i: (0, 0)),            # Wh resident
            pl.BlockSpec((1, fout), lambda i: (0, 0)),              # bh
            pl.BlockSpec((fout, 2 * fout), lambda i: (0, 0)),       # Wq||Wk resident
            pl.BlockSpec((1, 2 * fout), lambda i: (0, 0)),          # bq||bk
        ],
        out_specs=(row_out, row_out, row_out),
        out_shape=out_shape,
        compiler_params=pltpu.CompilerParams(
            dimension_semantics=("parallel",),
            vmem_limit_bytes=48 * 1024 * 1024,
        ),
    )(prepped["scales"], x_bf16, prepped["wh"], prepped["bh"],
      prepped["wqk"], prepped["bqk"])


# ----------------------------------------------------------------------------
# Kernel 2: LorentzAgg (use_att=True, local_agg=True) + Lorentz normalization
# ----------------------------------------------------------------------------
def _make_agg_kernel(tk, resident):
    def kernel(scal_ref, qm_ref, k_ref, h_ref, adj_ref, out_ref):
        j = pl.program_id(1)

        @pl.when(j == 0)
        def _init():
            out_ref[...] = jnp.zeros_like(out_ref)

        if resident:
            # k/h are whole-array VMEM residents; slice the neighbour tile.
            off = pl.multiple_of(j * tk, tk)
            k_blk = k_ref[pl.ds(off, tk), :]
            h_blk = h_ref[pl.ds(off, tk), :]
        else:
            k_blk = k_ref[...]
            h_blk = h_ref[...]

        # cinner(q, k): q's time coordinate is already negated, so this is a
        # plain bf16 contraction on the feature axis (no in-kernel transpose).
        cinner = lax.dot_general(
            qm_ref[...], k_blk,
            dimension_numbers=(((1,), (1,)), ((), ())),
            preferred_element_type=jnp.float32)

        logits = (2.0 + 2.0 * cinner) * scal_ref[0] + scal_ref[1]
        att = jax.nn.sigmoid(logits) * adj_ref[...].astype(jnp.float32)

        out_ref[...] += jnp.dot(att.astype(jnp.bfloat16), h_blk,
                                preferred_element_type=jnp.float32)

        @pl.when(j == pl.num_programs(1) - 1)
        def _epilogue():
            support = out_ref[...]
            s0 = support[:, 0:1]
            is_col0 = lax.broadcasted_iota(jnp.int32, support.shape, 1) == 0
            space = jnp.where(is_col0, 0.0, support)
            # Lorentz inner <s,s> = -s0^2 + sum(space^2)
            inner = jnp.sum(space * space, axis=-1, keepdims=True) - s0 * s0
            out_ref[...] = support * lax.rsqrt(jnp.maximum(jnp.abs(inner), 1e-8))

    return kernel


def _lorentz_agg(qm, k, h, adj, agg_scalars, *, block_m=512, block_n=1024,
                 resident_budget_bytes=24 * 1024 * 1024):
    n, f = h.shape
    tm = _pick_tile(n, block_m, 32)     # row tile (covers int8/bf16 sublane tiling)
    tk = _pick_tile(n, block_n, 128)    # neighbour tile (lane aligned for adj)
    grid = (n // tm, n // tk)           # reduction (neighbour) axis last

    # k/h fully VMEM-resident if they fit (2 arrays x 2 pipeline buffers, bf16).
    resident = (2 * 2 * n * f * 2) <= resident_budget_bytes
    if resident:
        kh_spec = pl.BlockSpec((n, f), lambda i, j: (0, 0))     # DMA'd once
    else:
        kh_spec = pl.BlockSpec((tk, f), lambda i, j: (j, 0))    # streamed tiles

    return pl.pallas_call(
        _make_agg_kernel(tk, resident),
        grid=grid,
        in_specs=[
            pl.BlockSpec(memory_space=pltpu.MemorySpace.SMEM),   # [1/scale, bias]
            pl.BlockSpec((tm, f), lambda i, j: (i, 0)),          # qm rows (resident over j)
            kh_spec,                                             # k
            kh_spec,                                             # h
            pl.BlockSpec((tm, tk), lambda i, j: (i, j)),         # adj tile (int8/bf16)
        ],
        out_specs=pl.BlockSpec((tm, f), lambda i, j: (i, 0)),    # f32 accumulator
        out_shape=jax.ShapeDtypeStruct((n, f), jnp.float32),
        compiler_params=pltpu.CompilerParams(
            dimension_semantics=("parallel", "arbitrary"),
            vmem_limit_bytes=48 * 1024 * 1024,
        ),
    )(agg_scalars, qm, k, h, adj)


# ----------------------------------------------------------------------------
# Parameter init (mirrors LorentzLinear.reset_parameters / LorentzAgg.__init__)
# ----------------------------------------------------------------------------
def init_lorentz_linear(key, in_features, out_features, scale=10.0):
    stdv = 1.0 / math.sqrt(out_features)
    w = jax.random.uniform(
        key, (out_features, in_features), minval=-stdv, maxval=stdv,
        dtype=jnp.float32)
    # reset_parameters zeroes weight[:, idx] for idx in range(0, in, in) -> idx=0
    w = w.at[:, 0].set(0.0)
    b = jnp.zeros((out_features,), dtype=jnp.float32)
    log_scale = jnp.float32(math.log(scale))
    # return W^T so kernels compute x @ W^T + b like nn.Linear
    return w.T, b, log_scale


def init_lorentz_graph_convolution(key, in_features, out_features):
    k1, k2, k3 = jax.random.split(key, 3)
    return {
        "linear": init_lorentz_linear(k1, in_features, out_features),
        "query": init_lorentz_linear(k2, out_features, out_features),
        "key": init_lorentz_linear(k3, out_features, out_features),
        "att_scale": jnp.float32(math.sqrt(out_features)),   # LorentzAgg.scale
        "att_bias": jnp.float32(20.0),                        # LorentzAgg.bias
    }


def prepare_params(params):
    """One-time cast/pack of parameters for the kernels (avoids per-call
    converts): bf16 weights, Wq||Wk packed, scales/bias as SMEM scalars."""
    wh, bh, sh = params["linear"]
    wq, bq, sq = params["query"]
    wk, bk, sk = params["key"]
    fout = wh.shape[1]
    return {
        "wh": wh.astype(jnp.bfloat16),
        "bh": bh.reshape(1, fout).astype(jnp.float32),
        "wqk": jnp.concatenate([wq, wk], axis=1).astype(jnp.bfloat16),
        "bqk": jnp.concatenate([bq, bk]).reshape(1, 2 * fout).astype(jnp.float32),
        "scales": jnp.stack([jnp.exp(sh), jnp.exp(sq), jnp.exp(sk)]
                            ).astype(jnp.float32),
        "agg_scalars": jnp.stack([1.0 / params["att_scale"], params["att_bias"]]
                                 ).astype(jnp.float32),
    }


# ----------------------------------------------------------------------------
# Forward (matches LorentzGraphConvolution.forward: (x, adj) -> (h, adj))
# ----------------------------------------------------------------------------
def lorentz_graph_convolution(inputs, prepped, *, block_rows=256, block_m=512,
                              block_n=1024,
                              resident_budget_bytes=24 * 1024 * 1024,
                              binary_adj=True):
    x, adj = inputs
    n = x.shape[0]
    n_pad = _round_up(n, 128)           # guarantees sublane/lane-aligned tiles

    x_bf = x.astype(jnp.bfloat16)
    if binary_adj:
        # TODO(synk): int8 mask assumes 0/1 adjacency; use binary_adj=False
        # (bf16 values) for weighted/normalized adjacencies.
        adj_k = (adj != 0).astype(jnp.int8)
    else:
        adj_k = adj.astype(jnp.bfloat16)

    if n_pad != n:
        x_bf = jnp.pad(x_bf, ((0, n_pad - n), (0, 0)))
        adj_k = jnp.pad(adj_k, ((0, n_pad - n), (0, n_pad - n)))

    h, qm, k = _fused_projection(x_bf, prepped, block_rows=block_rows)
    out = _lorentz_agg(qm, k, h, adj_k, prepped["agg_scalars"],
                       block_m=block_m, block_n=block_n,
                       resident_budget_bytes=resident_budget_bytes)
    return out[:n], adj


# ----------------------------------------------------------------------------
# Pure-JAX f32 reference (mirrors the PyTorch forward) for a sanity check
# ----------------------------------------------------------------------------
def _ref_lorentz_linear(x, w, b, log_scale):
    y = x @ w + b
    time = jax.nn.sigmoid(y[:, :1]) * jnp.exp(log_scale) + 1.1
    rest = y[:, 1:]
    scale = (time * time - 1.0) / jnp.maximum(
        jnp.sum(rest * rest, axis=-1, keepdims=True), 1e-8)
    return jnp.concatenate([time, rest * jnp.sqrt(scale)], axis=-1)


def _ref_forward(x, adj, params):
    h = _ref_lorentz_linear(x, *params["linear"])
    q = _ref_lorentz_linear(h, *params["query"])
    k = _ref_lorentz_linear(h, *params["key"])
    qm = jnp.concatenate([-q[:, :1], q[:, 1:]], axis=-1)
    att = jax.nn.sigmoid((2.0 + 2.0 * (qm @ k.T)) / params["att_scale"]
                         + params["att_bias"]) * adj
    support = att @ h
    inner = -support[:, :1] ** 2 + jnp.sum(support[:, 1:] ** 2, axis=-1,
                                           keepdims=True)
    denom = jnp.sqrt(jnp.maximum(jnp.abs(inner), 1e-8))
    return support / denom


# ----------------------------------------------------------------------------
if __name__ == "__main__":
    key = jax.random.PRNGKey(0)
    k_x, k_adj, k_params, k_x2, k_adj2 = jax.random.split(key, 5)

    in_features = 128
    out_features = 128    # multiple of 128 -> lane-dense stores & MXU columns

    params = init_lorentz_graph_convolution(k_params, in_features, out_features)
    prepped = prepare_params(params)

    # Case 1: aligned node count; small tiles so the demo exercises multi-step
    # grids (incl. the accumulate-over-neighbour-tiles path), with both the
    # VMEM-resident and the streamed k/h variants.
    n1 = 256
    x1 = jax.random.normal(k_x, (n1, in_features), dtype=jnp.float32)
    adj1 = (jax.random.uniform(k_adj, (n1, n1)) > 0.5).astype(jnp.float32)
    adj1 = jnp.maximum(adj1, jnp.eye(n1, dtype=jnp.float32))

    ref1 = _ref_forward(x1, adj1, params)
    for budget in (24 * 1024 * 1024, 0):   # resident k/h, then streamed k/h
        out1, adj_out = lorentz_graph_convolution(
            (x1, adj1), prepped, block_rows=64, block_m=64, block_n=128,
            resident_budget_bytes=budget)
        jax.block_until_ready(out1)
        jax.block_until_ready(adj_out)
        assert out1.shape == (n1, out_features)
        assert bool(jnp.all(jnp.isfinite(out1)))
        err1 = float(jnp.max(jnp.abs(out1 - ref1)))
        assert err1 < 5e-2, f"max abs error vs f32 reference: {err1}"

    # Case 2: unaligned node count (exercises the zero-pad path), default tiles.
    n2 = 200
    x2 = jax.random.normal(k_x2, (n2, in_features), dtype=jnp.float32)
    adj2 = (jax.random.uniform(k_adj2, (n2, n2)) > 0.5).astype(jnp.float32)
    adj2 = jnp.maximum(adj2, jnp.eye(n2, dtype=jnp.float32))

    out2, _ = lorentz_graph_convolution((x2, adj2), prepped)
    jax.block_until_ready(out2)
    assert out2.shape == (n2, out_features)
    ref2 = _ref_forward(x2, adj2, params)
    err2 = float(jnp.max(jnp.abs(out2 - ref2)))
    assert err2 < 5e-2, f"padded-case max abs error vs f32 reference: {err2}"

    print("KERNEL_OK")
</pallas_src>

<mosaic_0001>
module attributes {stable_mosaic.version = 11 : i64} {
  func.func @_lorentz_proj_kernel(%arg0: i32, %arg1: memref<3xf32, #tpu.memory_space<smem>>, %arg2: memref<64x128xbf16, #tpu.memory_space<vmem>>, %arg3: memref<128x128xbf16, #tpu.memory_space<vmem>>, %arg4: memref<1x128xf32, #tpu.memory_space<vmem>>, %arg5: memref<128x256xbf16, #tpu.memory_space<vmem>>, %arg6: memref<1x256xf32, #tpu.memory_space<vmem>>, %arg7: memref<64x128xbf16, #tpu.memory_space<vmem>>, %arg8: memref<64x128xbf16, #tpu.memory_space<vmem>>, %arg9: memref<64x128xbf16, #tpu.memory_space<vmem>>) attributes {dimension_semantics = [#tpu.dimension_semantics<parallel>], iteration_bounds = array<i64: 4>, scalar_prefetch = 0 : i64, scratch_operands = 0 : i64, tpu.core_type = #tpu.core_type<tc>, window_params = [{transform_indices = @transform_0, window_bounds = array<i64: 3>}, {transform_indices = @transform_1, window_bounds = array<i64: 64, 128>}, {pipeline_mode = #tpu.pipeline_mode<synchronous>, transform_indices = @transform_2, window_bounds = array<i64: 128, 128>}, {pipeline_mode = #tpu.pipeline_mode<synchronous>, transform_indices = @transform_3, window_bounds = array<i64: 1, 128>}, {pipeline_mode = #tpu.pipeline_mode<synchronous>, transform_indices = @transform_4, window_bounds = array<i64: 128, 256>}, {pipeline_mode = #tpu.pipeline_mode<synchronous>, transform_indices = @transform_5, window_bounds = array<i64: 1, 256>}, {transform_indices = @transform_6, window_bounds = array<i64: 64, 128>}, {transform_indices = @transform_7, window_bounds = array<i64: 64, 128>}, {transform_indices = @transform_8, window_bounds = array<i64: 64, 128>}]} {
    %0 = tpu.iota {dimensions = array<i32: 1>} : vector<64x128xi32>
    %c0_i32 = arith.constant 0 : i32
    %1 = vector.broadcast %c0_i32 : i32 to vector<64x128xi32>
    %2 = arith.cmpi eq, %0, %1 : vector<64x128xi32>
    %c0 = arith.constant 0 : index
    %c0_0 = arith.constant 0 : index
    %3 = vector.load %arg2[%c0, %c0_0] : memref<64x128xbf16, #tpu.memory_space<vmem>>, vector<64x128xbf16>
    %c0_1 = arith.constant 0 : index
    %c0_2 = arith.constant 0 : index
    %4 = vector.load %arg3[%c0_1, %c0_2] : memref<128x128xbf16, #tpu.memory_space<vmem>>, vector<128x128xbf16>
    %cst = arith.constant dense<0.000000e+00> : vector<64x128xf32>
    %5 = tpu.matmul %3, %4, %cst {dimension_numbers = #tpu.dot_dimension_numbers<[1], [0], [0], [1], [0, 0, 1, 1], [], []>} : vector<64x128xbf16>, vector<128x128xbf16>, vector<64x128xf32> -> vector<64x128xf32>
    %c0_3 = arith.constant 0 : index
    %c0_4 = arith.constant 0 : index
    %6 = vector.load %arg4[%c0_3, %c0_4] : memref<1x128xf32, #tpu.memory_space<vmem>>, vector<1x128xf32>
    %7 = vector.broadcast %6 : vector<1x128xf32> to vector<64x128xf32>
    %8 = arith.addf %5, %7 : vector<64x128xf32>
    %c0_5 = arith.constant 0 : index
    %9 = memref.load %arg1[%c0_5] : memref<3xf32, #tpu.memory_space<smem>>
    %10 = vector.extract_strided_slice %8 {offsets = [0, 0], sizes = [64, 1], strides = [1, 1]} : vector<64x128xf32> to vector<64x1xf32>
    %11 = arith.negf %10 : vector<64x1xf32>
    %12 = math.exp %11 : vector<64x1xf32>
    %cst_6 = arith.constant 1.000000e+00 : f32
    %13 = vector.broadcast %cst_6 : f32 to vector<64x1xf32>
    %14 = arith.addf %13, %12 : vector<64x1xf32>
    %15 = arith.divf %13, %14 : vector<64x1xf32>
    %16 = vector.broadcast %9 : f32 to vector<64x1xf32>
    %17 = arith.mulf %15, %16 : vector<64x1xf32>
    %cst_7 = arith.constant 1.100000e+00 : f32
    %18 = vector.broadcast %cst_7 : f32 to vector<64x1xf32>
    %19 = arith.addf %17, %18 : vector<64x1xf32>
    %cst_8 = arith.constant 0.000000e+00 : f32
    %20 = vector.broadcast %cst_8 : f32 to vector<64x128xf32>
    %21 = arith.select %2, %20, %8 : vector<64x128xi1>, vector<64x128xf32>
    %22 = arith.mulf %21, %21 : vector<64x128xf32>
    %cst_9 = arith.constant dense<0.000000e+00> : vector<64xf32>
    %23 = vector.multi_reduction <add>, %22, %cst_9 [1] : vector<64x128xf32> to vector<64xf32>
    %24 = vector.shape_cast %23 : vector<64xf32> to vector<64x1xf32>
    %cst_10 = arith.constant 9.99999993E-9 : f32
    %25 = vector.broadcast %cst_10 : f32 to vector<64x1xf32>
    %26 = arith.maximumf %24, %25 : vector<64x1xf32>
    %27 = arith.mulf %19, %19 : vector<64x1xf32>
    %cst_11 = arith.constant 1.000000e+00 : f32
    %28 = vector.broadcast %cst_11 : f32 to vector<64x1xf32>
    %29 = arith.subf %27, %28 : vector<64x1xf32>
    %30 = math.sqrt %29 : vector<64x1xf32>
    %31 = math.rsqrt %26 : vector<64x1xf32>
    %32 = arith.mulf %30, %31 : vector<64x1xf32>
    %33 = vector.broadcast %32 : vector<64x1xf32> to vector<64x128xf32>
    %34 = arith.mulf %8, %33 : vector<64x128xf32>
    %35 = vector.shape_cast %19 : vector<64x1xf32> to vector<64x1xf32>
    %36 = vector.broadcast %35 : vector<64x1xf32> to vector<64x128xf32>
    %37 = arith.select %2, %36, %34 : vector<64x128xi1>, vector<64x128xf32>
    %38 = arith.truncf %37 : vector<64x128xf32> to vector<64x128xbf16>
    %c0_12 = arith.constant 0 : index
    %c0_13 = arith.constant 0 : index
    %39 = vector.load %arg7[%c0_12, %c0_13] : memref<64x128xbf16, #tpu.memory_space<vmem>>, vector<64x128xbf16>
    tpu.vector_store %arg7[%c0_12, %c0_13], %38 {strides = array<i32>} : memref<64x128xbf16, #tpu.memory_space<vmem>>, vector<64x128xbf16>,
    %c0_14 = arith.constant 0 : index
    %c0_15 = arith.constant 0 : index
    %40 = vector.load %arg5[%c0_14, %c0_15] : memref<128x256xbf16, #tpu.memory_space<vmem>>, vector<128x256xbf16>
    %cst_16 = arith.constant dense<0.000000e+00> : vector<64x256xf32>
    %41 = tpu.matmul %38, %40, %cst_16 {dimension_numbers = #tpu.dot_dimension_numbers<[1], [0], [0], [1], [0, 0, 1, 1], [], []>} : vector<64x128xbf16>, vector<128x256xbf16>, vector<64x256xf32> -> vector<64x256xf32>
    %c0_17 = arith.constant 0 : index
    %c0_18 = arith.constant 0 : index
    %42 = vector.load %arg6[%c0_17, %c0_18] : memref<1x256xf32, #tpu.memory_space<vmem>>, vector<1x256xf32>
    %43 = vector.broadcast %42 : vector<1x256xf32> to vector<64x256xf32>
    %44 = arith.addf %41, %43 : vector<64x256xf32>
    %45 = vector.extract_strided_slice %44 {offsets = [0, 0], sizes = [64, 128], strides = [1, 1]} : vector<64x256xf32> to vector<64x128xf32>
    %c1 = arith.constant 1 : index
    %46 = memref.load %arg1[%c1] : memref<3xf32, #tpu.memory_space<smem>>
    %47 = vector.extract_strided_slice %45 {offsets = [0, 0], sizes = [64, 1], strides = [1, 1]} : vector<64x128xf32> to vector<64x1xf32>
    %48 = arith.negf %47 : vector<64x1xf32>
    %49 = math.exp %48 : vector<64x1xf32>
    %cst_19 = arith.constant 1.000000e+00 : f32
    %50 = vector.broadcast %cst_19 : f32 to vector<64x1xf32>
    %51 = arith.addf %50, %49 : vector<64x1xf32>
    %52 = arith.divf %50, %51 : vector<64x1xf32>
    %53 = vector.broadcast %46 : f32 to vector<64x1xf32>
    %54 = arith.mulf %52, %53 : vector<64x1xf32>
    %cst_20 = arith.constant 1.100000e+00 : f32
    %55 = vector.broadcast %cst_20 : f32 to vector<64x1xf32>
    %56 = arith.addf %54, %55 : vector<64x1xf32>
    %cst_21 = arith.constant 0.000000e+00 : f32
    %57 = vector.broadcast %cst_21 : f32 to vector<64x128xf32>
    %58 = arith.select %2, %57, %45 : vector<64x128xi1>, vector<64x128xf32>
    %59 = arith.mulf %58, %58 : vector<64x128xf32>
    %cst_22 = arith.constant dense<0.000000e+00> : vector<64xf32>
    %60 = vector.multi_reduction <add>, %59, %cst_22 [1] : vector<64x128xf32> to vector<64xf32>
    %61 = vector.shape_cast %60 : vector<64xf32> to vector<64x1xf32>
    %cst_23 = arith.constant 9.99999993E-9 : f32
    %62 = vector.broadcast %cst_23 : f32 to vector<64x1xf32>
    %63 = arith.maximumf %61, %62 : vector<64x1xf32>
    %64 = arith.mulf %56, %56 : vector<64x1xf32>
    %cst_24 = arith.constant 1.000000e+00 : f32
    %65 = vector.broadcast %cst_24 : f32 to vector<64x1xf32>
    %66 = arith.subf %64, %65 : vector<64x1xf32>
    %67 = math.sqrt %66 : vector<64x1xf32>
    %68 = math.rsqrt %63 : vector<64x1xf32>
    %69 = arith.mulf %67, %68 : vector<64x1xf32>
    %cst_25 = arith.constant 0.000000e+00 : f32
    %70 = vector.broadcast %cst_25 : f32 to vector<64x1xf32>
    %71 = arith.subf %70, %56 : vector<64x1xf32>
    %72 = vector.broadcast %69 : vector<64x1xf32> to vector<64x128xf32>
    %73 = arith.mulf %45, %72 : vector<64x128xf32>
    %74 = vector.shape_cast %71 : vector<64x1xf32> to vector<64x1xf32>
    %75 = vector.broadcast %74 : vector<64x1xf32> to vector<64x128xf32>
    %76 = arith.select %2, %75, %73 : vector<64x128xi1>, vector<64x128xf32>
    %77 = arith.truncf %76 : vector<64x128xf32> to vector<64x128xbf16>
    %c0_26 = arith.constant 0 : index
    %c0_27 = arith.constant 0 : index
    %78 = vector.load %arg8[%c0_26, %c0_27] : memref<64x128xbf16, #tpu.memory_space<vmem>>, vector<64x128xbf16>
    tpu.vector_store %arg8[%c0_26, %c0_27], %77 {strides = array<i32>} : memref<64x128xbf16, #tpu.memory_space<vmem>>, vector<64x128xbf16>,
    %79 = vector.extract_strided_slice %44 {offsets = [0, 128], sizes = [64, 128], strides = [1, 1]} : vector<64x256xf32> to vector<64x128xf32>
    %c2 = arith.constant 2 : index
    %80 = memref.load %arg1[%c2] : memref<3xf32, #tpu.memory_space<smem>>
    %81 = vector.extract_strided_slice %79 {offsets = [0, 0], sizes = [64, 1], strides = [1, 1]} : vector<64x128xf32> to vector<64x1xf32>
    %82 = arith.negf %81 : vector<64x1xf32>
    %83 = math.exp %82 : vector<64x1xf32>
    %cst_28 = arith.constant 1.000000e+00 : f32
    %84 = vector.broadcast %cst_28 : f32 to vector<64x1xf32>
    %85 = arith.addf %84, %83 : vector<64x1xf32>
    %86 = arith.divf %84, %85 : vector<64x1xf32>
    %87 = vector.broadcast %80 : f32 to vector<64x1xf32>
    %88 = arith.mulf %86, %87 : vector<64x1xf32>
    %cst_29 = arith.constant 1.100000e+00 : f32
    %89 = vector.broadcast %cst_29 : f32 to vector<64x1xf32>
    %90 = arith.addf %88, %89 : vector<64x1xf32>
    %cst_30 = arith.constant 0.000000e+00 : f32
    %91 = vector.broadcast %cst_30 : f32 to vector<64x128xf32>
    %92 = arith.select %2, %91, %79 : vector<64x128xi1>, vector<64x128xf32>
    %93 = arith.mulf %92, %92 : vector<64x128xf32>
    %cst_31 = arith.constant dense<0.000000e+00> : vector<64xf32>
    %94 = vector.multi_reduction <add>, %93, %cst_31 [1] : vector<64x128xf32> to vector<64xf32>
    %95 = vector.shape_cast %94 : vector<64xf32> to vector<64x1xf32>
    %cst_32 = arith.constant 9.99999993E-9 : f32
    %96 = vector.broadcast %cst_32 : f32 to vector<64x1xf32>
    %97 = arith.maximumf %95, %96 : vector<64x1xf32>
    %98 = arith.mulf %90, %90 : vector<64x1xf32>
    %cst_33 = arith.constant 1.000000e+00 : f32
    %99 = vector.broadcast %cst_33 : f32 to vector<64x1xf32>
    %100 = arith.subf %98, %99 : vector<64x1xf32>
    %101 = math.sqrt %100 : vector<64x1xf32>
    %102 = math.rsqrt %97 : vector<64x1xf32>
    %103 = arith.mulf %101, %102 : vector<64x1xf32>
    %104 = vector.broadcast %103 : vector<64x1xf32> to vector<64x128xf32>
    %105 = arith.mulf %79, %104 : vector<64x128xf32>
    %106 = vector.shape_cast %90 : vector<64x1xf32> to vector<64x1xf32>
    %107 = vector.broadcast %106 : vector<64x1xf32> to vector<64x128xf32>
    %108 = arith.select %2, %107, %105 : vector<64x128xi1>, vector<64x128xf32>
    %109 = arith.truncf %108 : vector<64x128xf32> to vector<64x128xbf16>
    %c0_34 = arith.constant 0 : index
    %c0_35 = arith.constant 0 : index
    %110 = vector.load %arg9[%c0_34, %c0_35] : memref<64x128xbf16, #tpu.memory_space<vmem>>, vector<64x128xbf16>
    tpu.vector_store %arg9[%c0_34, %c0_35], %109 {strides = array<i32>} : memref<64x128xbf16, #tpu.memory_space<vmem>>, vector<64x128xbf16>,
    return
  }
  func.func @transform_0(%arg0: i32) -> i32 {
    %c0_i32 = arith.constant 0 : i32
    %c0_i32_0 = arith.constant 0 : i32
    return %c0_i32 : i32
  }
  func.func @transform_1(%arg0: i32) -> (i32, i32) {
    %c0_i32 = arith.constant 0 : i32
    %c0_i32_0 = arith.constant 0 : i32
    return %arg0, %c0_i32 : i32, i32
  }
  func.func @transform_2(%arg0: i32) -> (i32, i32) {
    %c0_i32 = arith.constant 0 : i32
    %c0_i32_0 = arith.constant 0 : i32
    %c0_i32_1 = arith.constant 0 : i32
    return %c0_i32, %c0_i32_0 : i32, i32
  }
  func.func @transform_3(%arg0: i32) -> (i32, i32) {
    %c0_i32 = arith.constant 0 : i32
    %c0_i32_0 = arith.constant 0 : i32
    %c0_i32_1 = arith.constant 0 : i32
    return %c0_i32, %c0_i32_0 : i32, i32
  }
  func.func @transform_4(%arg0: i32) -> (i32, i32) {
    %c0_i32 = arith.constant 0 : i32
    %c0_i32_0 = arith.constant 0 : i32
    %c0_i32_1 = arith.constant 0 : i32
    return %c0_i32, %c0_i32_0 : i32, i32
  }
  func.func @transform_5(%arg0: i32) -> (i32, i32) {
    %c0_i32 = arith.constant 0 : i32
    %c0_i32_0 = arith.constant 0 : i32
    %c0_i32_1 = arith.constant 0 : i32
    return %c0_i32, %c0_i32_0 : i32, i32
  }
  func.func @transform_6(%arg0: i32) -> (i32, i32) {
    %c0_i32 = arith.constant 0 : i32
    %c0_i32_0 = arith.constant 0 : i32
    return %arg0, %c0_i32 : i32, i32
  }
  func.func @transform_7(%arg0: i32) -> (i32, i32) {
    %c0_i32 = arith.constant 0 : i32
    %c0_i32_0 = arith.constant 0 : i32
    return %arg0, %c0_i32 : i32, i32
  }
  func.func @transform_8(%arg0: i32) -> (i32, i32) {
    %c0_i32 = arith.constant 0 : i32
    %c0_i32_0 = arith.constant 0 : i32
    return %arg0, %c0_i32 : i32, i32
  }
}

</mosaic_0001>

<bundles_post_ra>
// kernel: tpu_custom_call.1
= control target key start
LH: loop header
LB: loop body
LE: loop exit
PB: predicated region body
PF: predicated region fallthrough
CT: control target
= control target key end

     0   :  { %14 = vsyncpa [#allocation5], 0  ;;  %s3846_s0 = inlined_call_operand.hbm [shape: f32[3], index: 0, kind: input, shape index: {}]   ;;  %s3847_s1 = inlined_call_operand.hbm [shape: bf16[256,128], index: 1, kind: input, shape index: {}]   ;;  %s3848_s2 = inlined_call_operand.hbm [shape: bf16[128,128], index: 2, kind: input, shape index: {}]   ;;  %s3849_s3 = inlined_call_operand.vmem [shape: f32[1,128], index: 3, kind: input, shape index: {}]   ;;  %s3850_s4 = inlined_call_operand.hbm [shape: bf16[128,256], index: 4, kind: input, shape index: {}]   ;;  %s3851_s5 = inlined_call_operand.vmem [shape: f32[1,256], index: 5, kind: input, shape index: {}]   ;;  %s3852_s6 = inlined_call_operand.hbm [shape: bf16[256,128], index: 6, kind: output, shape index: {0}]   ;;  %s3853_s7 = inlined_call_operand.hbm [shape: bf16[256,128], index: 7, kind: output, shape index: {1}]   ;;  %s3854_s8 = inlined_call_operand.hbm [shape: bf16[256,128], index: 8, kind: output, shape index: {2}]  }
   0x1   :  { %15 = vsyncpa [#allocation3], 0 }
   0x2   :  { %17 = vsyncpa [#allocation3 + $0x1], 0 }
   0x3   :  { %18 = vsyncpa [#allocation8], 0 }
   0x4   :  { %19 = vsyncpa [#allocation4], 0 }
   0x5   :  { %21 = vsyncpa [#allocation4 + $0x1], 0 }
   0x6   :  { %22 = vsyncpa [#allocation12], 0 }
   0x7   :  { %24 = vsyncpa [#allocation12 + $0x1], 0  ;;  %s2901_s27 = smov 0   ;;  %s2903_s28 = smov 0  }
   0x8   :  { %s2905_s29 = smov 0   ;;  %s2907_s30 = smov 0  }
   0x9 LB: > { %3861 = sst [smem:[#allocation19_spill]] %s2828_s27  ;;  %s2922_s9 = sadd.s32 4294967295, %s2840_s30   ;;  %s2840_s30 = sphi %s2907_s30, %s3884_s30   ;;  %s2836_s29 = sphi %s2905_s29, %s3883_s29   ;;  %s2832_s28 = sphi %s2903_s28, %s3882_s28   ;;  %s2828_s27 = sphi %s2901_s27, %s3881_s27  }
   0xa   : > { %s3858_s10 = sadd.s32 4294967294, %s2840_s30   ;;  %p71_p0 = scmp.ne.s32.totalorder %s2832_s28, %s2828_s27 }
   0xb   : > { %p3855_p1 = scmp.eq.s32.totalorder %s2922_s9, 0  ;;  %p185_p3 = scmp.eq.s32.totalorder %s3858_s10, 3 }
   0xc   : > { %p1960_p5 = scmp.ge.s32.totalorder %s2840_s30, 1  ;;  %p244_p7 = scmp.lt.s32.totalorder %s2840_s30, 5 }
   0xd   : > { %p2933_p4 = por %p3855_p1, %p71_p0  ;;  %p2938_p6 = por %p185_p3, %p71_p0 }
   0xe   : > { %p2943_p8 = pnand %p1960_p5, %p244_p7  ;;  %s2842_s14 = smov [#allocation7]  }
   0xf   : > { %s3862_s11 = scalar_select %p2933_p4, 1, 0 }
  0x10   : > { %s3863_s12 = scalar_select %p2938_p6, 1, 0 }
  0x11   : > { %s3865_s13 = scalar_select %p2943_p8, 1, 0 }
  0x12   : > { %3864 = sst [smem:[#allocation20_spill]] %s3863_s12  ;;  %s265_s15 = sshll.u32 %s2842_s14, 4  ;;  %s266_s15 = int_to_ptr.vmem [resolvable:$true] %s265_s15 }
  0x13   : > { %p2243_p9 = pneg %p2943_p8  ;;  %s2843_s17 = smov [#allocation9]  }
  0x14   : > { %s281_s18 = sshll.u32 %s2843_s17, 4  ;;  %s2607_s21 = scalar_lea.hbm %s3848_s2, 1024  ;;  %s2955_s18 = int_to_ptr.vmem [resolvable:$true] %s281_s18 }
  0x15   : > { %p2951_p10 = pnand %p2243_p9, %p3855_p1  ;;  %p2608_p11 = scmp.ne.s32.totalorder %s3848_s2, %s2607_s21 }
  0x16   : > { %p2614_p3 = scmp.lt.u32.totalorder %s2607_s21, %s3848_s2 }
  0x17   : > { %p2965_p12 = pneg %p2951_p10 }
  0x19   : > { %p2610_p13 = pnand %p2965_p12, %p2608_p11 }
  0x1b   : > { %p2611_p0 = pneg %p2610_p13 }
  0x1d   : > { %p2616_p5 = pnand %p2614_p3, %p2611_p0 }
  0x1f   : > { %2619 = shalt.err (!%p2616_p5)
}
  0x20   : > { %s2620_s14 = scalar_lea.vmem %s266_s15, 1024  ;;  %p2628_p2 = scmp.lt.s32.totalorder %s266_s15, %s266_s15 }
  0x21   : > { %p2621_p7 = scmp.ne.s32.totalorder %s266_s15, %s2620_s14  ;;  %p2629_p6 = scmp.lt.s32.totalorder %s2620_s14, %s2620_s14 }
  0x23   : > { %p2623_p9 = pnand %p2621_p7, %p2965_p12  ;;  %p2630_p4 = por %p2629_p6, %p2628_p2 }
  0x25   : > { %p2624_p1 = pneg %p2623_p9 }
  0x27   : > { %p2631_p8 = pnand %p2630_p4, %p2624_p1 }
  0x29   : > { %2634 = shalt.err (!%p2631_p8)
}
  0x2a   : > { %s2844_s17 = smov 64   ;;  %s2845_s19 = smov 4  }
  0x2b   : > { %2249 = dma.hbm_to_vmem [thread:$0]  (!%p2951_p10), %s3848_s2, 1024, %s266_s15, [#allocation8], %s2844_s17, %s2844_s17, %s2845_s19  }
  0x2c   : > { %s2635_s25 = scalar_lea.hbm %s3846_s0, 16 }
  0x2d   : > { %p2636_p1 = scmp.ne.s32.totalorder %s3846_s0, %s2635_s25  ;;  %p2642_p6 = scmp.lt.u32.totalorder %s2635_s25, %s3846_s0 }
  0x2f   : > { %p2638_p2 = pnand %p2636_p1, %p2965_p12 }
  0x31   : > { %p2639_p4 = pneg %p2638_p2 }
  0x33   : > { %p2644_p8 = pnand %p2642_p6, %p2639_p4 }
  0x35   : > { %2647 = shalt.err (!%p2644_p8)
}
  0x36   : > { %s2846_s27 = smov [#allocation2]   ;;  %s2648_s23 = scalar_lea.hbm %s3850_s4, 2048 }
  0x37   : > { %2246 = dma.hbm_to_smem (!%p2951_p10), %s3846_s0, 16, %s2846_s27, [#allocation5]  }
  0x38   : > { %p2649_p11 = scmp.ne.s32.totalorder %s3850_s4, %s2648_s23  ;;  %p2655_p3 = scmp.lt.u32.totalorder %s2648_s23, %s3850_s4 }
  0x3a   : > { %p2651_p13 = pnand %p2649_p11, %p2965_p12 }
  0x3c   : > { %p2652_p0 = pneg %p2651_p13 }
  0x3e   : > { %p2657_p5 = pnand %p2655_p3, %p2652_p0 }
  0x40   : > { %2660 = shalt.err (!%p2657_p5)
}
  0x41   : > { %s2661_s27 = scalar_lea.vmem %s2955_s18, 2048  ;;  %p2669_p2 = scmp.lt.s32.totalorder %s2955_s18, %s2955_s18 }
  0x42   : > { %p2662_p7 = scmp.ne.s32.totalorder %s2955_s18, %s2661_s27  ;;  %p2670_p4 = scmp.lt.s32.totalorder %s2661_s27, %s2661_s27 }
  0x44   : > { %p2664_p9 = pnand %p2662_p7, %p2965_p12  ;;  %p2671_p6 = por %p2670_p4, %p2669_p2 }
  0x46   : > { %p2665_p1 = pneg %p2664_p9 }
  0x48   : > { %p2672_p8 = pnand %p2671_p6, %p2665_p1 }
  0x4a   : > { %2675 = shalt.err (!%p2672_p8)
}
  0x4b   : > { %s2847_s25 = smov 128   ;;  %s2848_s24 = smov 8  }
  0x4c   : > { %2252 = dma.hbm_to_vmem [thread:$0]  (!%p2951_p10), %s3850_s4, 2048, %s2955_s18, [#allocation8], %s2847_s25, %s2847_s25, %s2848_s24  }
  0x4d   : > { %s3024_s21 = sadd.s32 1, %s2840_s30   ;;  %s58_s23 = sadd.s32 1, %s2836_s29 }
  0x4e   : > { %s55_s22 = ssub.s32 %s2840_s30, %s3024_s21  ;;  %p65_p11 = scmp.ne.s32.totalorder %s2836_s29, %s2832_s28 }
  0x4f   : > { %p56_p12 = scmp.eq.s32.totalorder %s55_s22, 0  ;;  %p66_p13 = scmp.eq.s32.totalorder %s2840_s30, 0 }
  0x50   : > { %p2270_p0 = scmp.lt.s32.totalorder %s2840_s30, 4  ;;  %p3868_p5 = scmp.eq.s32.totalorder %s2922_s9, 3 }
  0x51   : > { %s3034_s26 = scalar_select %p56_p12, %s2836_s29, %s58_s23  }
  0x52   : > { %p67_p3 = por %p66_p13, %p65_p11  ;;  %p3038_p7 = por %p3868_p5, %p65_p11 }
  0x53   : > { %s298_s16 = sand.u32 1, %s2836_s29   ;;  %s2090_s10 = sshll.u32 %s2840_s30, 9 }
  0x54   : > { %s1965_s18 = sshll.u32 %s298_s16, 5  ;;  %s3047_s25 = scalar_lea.hbm %s3847_s1, %s2090_s10 }
  0x55   : > { %s302_s24 = scalar_lea.vmem [#allocation6], %s1965_s18  ;;  %p3049_p10 = pnand %p2270_p0, %p67_p3 }
  0x56   : > { %s309_s15 = sshll.u32 %s302_s24, 4  ;;  %s3055_s22 = scalar_lea.sflag [#allocation3], %s298_s16  ;;  %s3053_s15 = int_to_ptr.vmem [resolvable:$true] %s309_s15 }
  0x57   : > { %s2676_s23 = scalar_lea.hbm %s3047_s25, 512  ;;  %p2678_p1 = pneg %p3049_p10 }
  0x58   : > { %p2677_p9 = scmp.ne.s32.totalorder %s3047_s25, %s2676_s23  ;;  %s2681_s12 = scalar_lea.hbm %s3847_s1, 2048 }
  0x59   : > { %p2682_p6 = scmp.lt.u32.totalorder %s3047_s25, %s3847_s1  ;;  %p2683_p8 = scmp.lt.u32.totalorder %s2681_s12, %s2676_s23 }
  0x5a   : > { %p2679_p2 = pnand %p2678_p1, %p2677_p9  ;;  %p2685_p11 = scmp.lt.u32.totalorder %s2676_s23, %s3047_s25 }
  0x5b   : > { %p2684_p12 = por %p2683_p8, %p2682_p6 }
  0x5c   : > { %p2680_p4 = pneg %p2679_p2 }
  0x5d   : > { %p2686_p13 = por %p2685_p11, %p2684_p12 }
  0x5f   : > { %p2687_p0 = pnand %p2686_p13, %p2680_p4 }
  0x61   : > { %2690 = shalt.err (!%p2687_p0)
}
  0x62   : > { %s2691_s16 = scalar_lea.vmem %s3053_s15, 512  ;;  %s2849_s10 = smov [#allocation6]  }
  0x63   : > { %p2692_p3 = scmp.ne.s32.totalorder %s3053_s15, %s2691_s16  ;;  %s2696_s18 = sshll.u32 %s2849_s10, 4  ;;  %s2697_s18 = int_to_ptr.vmem [resolvable:$false] %s2696_s18 }
  0x64   : > { %s2698_s27 = scalar_lea.vmem %s2697_s18, 1024  ;;  %p2699_p2 = scmp.lt.s32.totalorder %s3053_s15, %s2697_s18 }
  0x65   : > { %p2694_p5 = pnand %p2692_p3, %p2678_p1  ;;  %p2700_p6 = scmp.lt.s32.totalorder %s2698_s27, %s2691_s16 }
  0x67   : > { %p2695_p9 = pneg %p2694_p5  ;;  %p2701_p8 = por %p2700_p6, %p2699_p2 }
  0x69   : > { %p2702_p12 = pnand %p2701_p8, %p2695_p9 }
  0x6b   : > { %2705 = shalt.err (!%p2702_p12)
}
  0x6c   : > { %2256 = dma.hbm_to_vmem [thread:$0]  (!%p3049_p10), %s3047_s25, 512, %s3053_s15, %s3055_s22, %s2844_s17, %s2844_s17, %s2845_s19  }
  0x6d   : > { %p3871_p1 = scmp.ne.s32.totalorder %s3865_s13, 0 }
  0x6e   : > { %p3872_p4 = scmp.eq.s32.totalorder (!%p3871_p1), %s2922_s9, 0 }
  0x6f   : > { %321 = sbr.rel (%p3871_p1) target bundleno = 1256 (0x4e8), region = 44 }
  0x76   : > { %2807 = dma.done.wait (%p3872_p4), [#allocation5], 16   ;;  %p3873_p11 = pmov %p3872_p4 }
  0x77   : > { %s3093_s23 = sand.u32 1, %s2832_s28   ;;  %p3874_p10 = scmp.ne.s32.totalorder %s3862_s11, 0 }
  0x78   : > { %2809 = vsyncadd (%p3873_p11), [#allocation5], 4294967280  ;;  %s3096_s20 = sshll.u32 %s3093_s23, 5  ;;  %s328_s12 = scalar_lea.sflag [#allocation3], %s3093_s23 }
  0x79   : > { %s3100_s17 = scalar_lea.vmem [#allocation6], %s3096_s20 }
  0x7a   : > { %2811 = dma.done.wait (%p3874_p10), %s328_s12, 512  }
  0x7b   : > { %2813 = vsyncadd (%p3874_p10), %s328_s12, 4294966784  ;;  %p3875_p13 = pmov %p3872_p4 }
  0x7c   : > { %p3876_p0 = pmov %p3872_p4 }
  0x7d   : > { %2815 = dma.done.wait (%p3875_p13), [#allocation8], 3072  }
  0x7e   : > { %2817 = vsyncadd (%p3876_p0), [#allocation8], 4294964224 }
  0x7f   : > { %344 = sfence }
  0x80   : > { %v2379_v0 = vld [vmem:[#allocation7] sm:$0xff]   ;;  %v2380_v1 = vld [vmem:[#allocation7 + $0x8] sm:$0xff]   ;;  %v2381_v2 = vld [vmem:[#allocation7 + $0x10] sm:$0xff]   ;;  %v2850_v12 = vmov 0   ;;  %v388_v13 = vlaneseq  ;;  %s559_s19 = sld [smem:[#allocation2]]  ;;  %s3288_s25 = scalar_lea.vmem [#allocation10], %s3096_s20 }
  0x81   : > { %2199 = vmatprep.subr.bf16.mxu0 %v2379_v0  ;;  %v2382_v3 = vld [vmem:[#allocation7 + $0x18] sm:$0xff]   ;;  %v2387_v4 = vld [vmem:[%s3100_s17] sm:$0xff]   ;;  %v2384_v6 = vld [vmem:[#allocation7 + $0x28] sm:$0xff]   ;;  %2318 = vset.pattern.permute.xlu1 %v2850_v12  ;;  %s2029_s24 = sld [smem:[#allocation2 + $0x1]]  ;;  %s2054_s16 = sld [smem:[#allocation2 + $0x2]] }
  0x82   : > { %2200 = vmatpush3.bf16.msra.mxu0 %v2379_v0  ;;  %2215 = vmatprep.mubr.bf16.mxu0 %v2387_v4  ;;  %v2383_v5 = vld [vmem:[#allocation7 + $0x20] sm:$0xff]   ;;  %v2385_v7 = vld [vmem:[#allocation7 + $0x30] sm:$0xff]   ;;  %v2386_v8 = vld [vmem:[#allocation7 + $0x38] sm:$0xff]   ;;  %v3118_v14 = vand.u32 127, %v388_v13  ;;  %s1762_s10 = sshll.u32 %s3288_s25, 4  ;;  %s3653_s18 = sshll.u32 %s2922_s9, 9  ;;  %s3650_s10 = int_to_ptr.vmem [resolvable:$true] %s1762_s10 }
  0x83   : > { %2201 = vmatprep.subr.bf16.mxu0 %v2380_v1  ;;  %v2388_v9 = vld [vmem:[%s3100_s17 + $0x8] sm:$0xff]   ;;  %v2389_v10 = vld [vmem:[%s3100_s17 + $0x10] sm:$0xff]   ;;  %v2390_v11 = vld [vmem:[%s3100_s17 + $0x18] sm:$0xff]   ;;  %2317 = vset.pattern.permute.xlu0 %v2850_v12  ;;  %s3659_s17 = scalar_lea.hbm %s3852_s6, %s3653_s18  ;;  %s1739_s11 = scalar_lea.sflag [#allocation4], %s3093_s23 }
  0x84   : > { %1029 = vmatprep.mubr.bf16.mxu1 %v2850_v12  ;;  %v1976_v15 = vld [vmem:[%s3849_s3] ss:$0 sm:$0xff]  ;;  %vm390_vm0 = vcmp.eq.s32.totalorder %v3118_v14, 0  ;;  %v2391_v62 = vld [vmem:[#allocation9 + $0x4] ss:$8 sps:$4 sm:$0xff]   ;;  %s2706_s13 = scalar_lea.vmem %s3650_s10, 512 }
  0x85   : > { %v2393_v63 = vld [vmem:[#allocation9] ss:$8 sps:$4 sm:$0xff]   ;;  %v2394_v0 = vld [vmem:[#allocation9 + $0x14] ss:$8 sps:$4 sm:$0xff]   ;;  %997 = vmatprep.subr.bf16.mxu1 %v2391_v62  ;;  %p2707_p3 = scmp.ne.s32.totalorder %s3650_s10, %s2706_s13 }
  0x86   : > { %2202 = vmatpush3.bf16.msra.mxu0 %v2380_v1  ;;  %v3166_v54 = vstv %s559_s19  ;;  %998 = vmatpush1.bf16.msra.mxu1 %v2393_v63  ;;  %v2396_v1 = vld [vmem:[#allocation9 + $0x10] ss:$8 sps:$4 sm:$0xff]   ;;  %v2400_v4 = vld [vmem:[#allocation9 + $0x34] ss:$8 sps:$4 sm:$0xff]   ;;  %s2851_s19 = smov [#allocation10]  }
  0x87   : > { %2203 = vmatprep.subr.bf16.mxu0 %v2381_v2  ;;  %999 = vmatprep.subr.bf16.mxu1 %v2394_v0  ;;  %p2708_p5 = pnand %p2707_p3, %p3038_p7 }
  0x89   : > { %p2709_p9 = pneg %p2708_p5 }
  0x8a   : > { %2204 = vmatpush3.bf16.msra.mxu0 %v2381_v2  ;;  %v2397_v2 = vld [vmem:[#allocation9 + $0x24] ss:$8 sps:$4 sm:$0xff]   ;;  %1000 = vmatpush1.bf16.msra.mxu1 %v2396_v1 }
  0x8b   : > { %2205 = vmatprep.subr.bf16.mxu0 %v2382_v3  ;;  %1001 = vmatprep.subr.bf16.mxu1 %v2397_v2 }
  0x8e   : > { %2206 = vmatpush3.bf16.msra.mxu0 %v2382_v3  ;;  %v2399_v3 = vld [vmem:[#allocation9 + $0x20] ss:$8 sps:$4 sm:$0xff]  }
  0x8f   : > { %2207 = vmatprep.subr.bf16.mxu0 %v2383_v5  ;;  %1002 = vmatpush1.bf16.msra.mxu1 %v2399_v3 }
  0x90   : > { %1003 = vmatprep.subr.bf16.mxu1 %v2400_v4 }
  0x92   : > { %2208 = vmatpush3.bf16.msra.mxu0 %v2383_v5  ;;  %v2402_v5 = vld [vmem:[#allocation9 + $0x30] ss:$8 sps:$4 sm:$0xff]  }
  0x93   : > { %2209 = vmatprep.subr.bf16.mxu0 %v2384_v6  ;;  %1004 = vmatpush1.bf16.msra.mxu1 %v2402_v5 }
  0x96   : > { %2210 = vmatpush3.bf16.msra.mxu0 %v2384_v6  ;;  %v2403_v6 = vld [vmem:[#allocation9 + $0x44] ss:$8 sps:$4 sm:$0xff]  }
  0x97   : > { %2211 = vmatprep.subr.bf16.mxu0 %v2385_v7  ;;  %1005 = vmatprep.subr.bf16.mxu1 %v2403_v6 }
  0x9a   : > { %2212 = vmatpush3.bf16.msra.mxu0 %v2385_v7  ;;  %v2405_v7 = vld [vmem:[#allocation9 + $0x40] ss:$8 sps:$4 sm:$0xff]  }
  0x9b   : > { %2213 = vmatprep.subr.bf16.mxu0 %v2386_v8  ;;  %1006 = vmatpush1.bf16.msra.mxu1 %v2405_v7 }
  0x9e   : > { %2214 = vmatpush3.bf16.msra.mxu0 %v2386_v8  ;;  %v2406_v8 = vld [vmem:[#allocation9 + $0x54] ss:$8 sps:$4 sm:$0xff]  }
  0x9f   : > { %1007 = vmatprep.subr.bf16.mxu1 %v2406_v8 }
  0xa1   : > { %2216 = vmatmul.mubr.bf16.vlgmr.msra.gmra.mrb[0].mxu0 %v2388_v9  ;;  %v2408_v9 = vld [vmem:[#allocation9 + $0x50] ss:$8 sps:$4 sm:$0xff]  }
  0xa2   : > { %2219 = vmatprep.mubr.bf16.mxu0 %v2389_v10  ;;  %1008 = vmatpush1.bf16.msra.mxu1 %v2408_v9 }
  0xa9   : > { %2220 = vmatmul.mubr.bf16.gmra.mrb[4].mxu0 %v2390_v11 }
 0x174   : > { %v2217_v16 = vpop.f32.mrb[0].mxu0 }
 0x175   : > { %v3124_v17 = vadd.f32 %v2217_v16, %v1976_v15  ;;  %v528_v18 = vpop.f32.mrb[1].mxu0 }
 0x176   : > { %v3126_v19 = vadd.f32 %v1976_v15, %v528_v18  ;;  %v2218_v20 = vpop.f32.mrb[2].mxu0 }
 0x177   : > { %v3128_v21 = vadd.f32 %v2218_v20, %v1976_v15  ;;  %v531_v22 = vpop.f32.mrb[3].mxu0  ;;  %v627_v23 = vsel %vm390_vm0, 0.0, %v3124_v17  ;;  %v1991_v10 = vmul.f32 -1.442695, %v3124_v17 }
 0x178   : > { %v1989_v24 = vmul.f32 -1.442695, %v3126_v19  ;;  %v3134_v25 = vadd.f32 %v1976_v15, %v531_v22  ;;  %v635_v26 = vmul.f32 %v627_v23, %v627_v23  ;;  %v625_v27 = vsel %vm390_vm0, 0.0, %v3126_v19 }
 0x179   : > { %v633_v28 = vmul.f32 %v625_v27, %v625_v27  ;;  %v628_v29 = vsel %vm390_vm0, 0.0, %v3128_v21  ;;  %v1992_v11 = vmul.f32 -1.442695, %v3128_v21 }
 0x17a   : > { %2415 = vpow2.f32 %v1989_v24  ;;  %v1990_v30 = vmul.f32 -1.442695, %v3134_v25  ;;  %645 = vadd.xlane.f32.xlu1 %v635_v26  ;;  %v626_v31 = vsel %vm390_vm0, 0.0, %v3134_v25  ;;  %v636_v33 = vmul.f32 %v628_v29, %v628_v29 }
 0x17b   : > { %641 = vadd.xlane.f32.xlu0 %v633_v28  ;;  %v634_v35 = vmul.f32 %v626_v31, %v626_v31 }
 0x17c   : > { %2417 = vpow2.f32 %v1990_v30  ;;  %v2221_v32 = vpop.f32.mrb[4].mxu0 }
 0x17d   : > { %v544_v34 = vpop.f32.mrb[5].mxu0  ;;  %v3146_v36 = vadd.f32 %v2221_v32, %v1976_v15 }
 0x17e   : > { %v3148_v37 = vadd.f32 %v1976_v15, %v544_v34  ;;  %v2222_v38 = vpop.f32.mrb[6].mxu0  ;;  %647 = vadd.xlane.f32.xlu1 %v636_v33 }
 0x17f   : > { %v547_v39 = vpop.f32.mrb[7].mxu0  ;;  %643 = vadd.xlane.f32.xlu0 %v634_v35  ;;  %v3150_v40 = vadd.f32 %v2222_v38, %v1976_v15  ;;  %v631_v43 = vsel %vm390_vm0, 0.0, %v3146_v36 }
 0x180   : > { %v3152_v41 = vadd.f32 %v1976_v15, %v547_v39  ;;  %v629_v42 = vsel %vm390_vm0, 0.0, %v3148_v37  ;;  %v639_v48 = vmul.f32 %v631_v43, %v631_v43  ;;  %v1995_v15 = vmul.f32 -1.442695, %v3146_v36 }
 0x181   : > { %v637_v44 = vmul.f32 %v629_v42, %v629_v42  ;;  %v632_v46 = vsel %vm390_vm0, 0.0, %v3150_v40  ;;  %v1993_v18 = vmul.f32 -1.442695, %v3148_v37  ;;  %v1996_v27 = vmul.f32 -1.442695, %v3150_v40 }
 0x182   : > { %v630_v45 = vsel %vm390_vm0, 0.0, %v3152_v41  ;;  %v640_v51 = vmul.f32 %v632_v46, %v632_v46  ;;  %v1994_v22 = vmul.f32 -1.442695, %v3152_v41 }
 0x183   : > { %649 = vadd.xlane.f32.xlu0 %v637_v44  ;;  %v638_v47 = vmul.f32 %v630_v45, %v630_v45 }
 0x184   : > { %v2416_v49 = vpop.eup %2415 }
 0x185   : > { %v584_v50 = vadd.f32 1.0, %v2416_v49  ;;  %651 = vadd.xlane.f32.xlu1 %v638_v47 }
 0x186   : > { %v2418_v52 = vpop.eup %2417 }
 0x187   : > { %2419 = vrcp.f32 %v584_v50  ;;  %v585_v53 = vadd.f32 1.0, %v2418_v52  ;;  %653 = vadd.xlane.f32.xlu0 %v639_v48 }
 0x189   : > { %2421 = vrcp.f32 %v585_v53  ;;  %655 = vadd.xlane.f32.xlu1 %v640_v51 }
 0x18a   : > { %2423 = vpow2.f32 %v1991_v10 }
 0x18b   : > { %2425 = vpow2.f32 %v1992_v11 }
 0x18c   : > { %2427 = vpow2.f32 %v1995_v15 }
 0x18d   : > { %2429 = vpow2.f32 %v1993_v18 }
 0x191   : > { %v2420_v55 = vpop.eup %2419 }
 0x192   : > { %v609_v56 = vmul.f32 %v2420_v55, %v3166_v54 }
 0x193   : > { %v2422_v57 = vpop.eup %2421 }
 0x194   : > { %v610_v58 = vmul.f32 %v2422_v57, %v3166_v54  ;;  %v617_v59 = vadd.f32 1.1, %v609_v56  ;;  %v2424_v16 = vpop.eup %2423 }
 0x195   : > { %v586_v20 = vadd.f32 1.0, %v2424_v16  ;;  %v2426_v23 = vpop.eup %2425 }
 0x196   : > { %v3170_v60 = vadd.f32 1.1, %v610_v58  ;;  %v587_v24 = vadd.f32 1.0, %v2426_v23  ;;  %v2428_v26 = vpop.eup %2427  ;;  %v665_v44 = vmul.f32 %v617_v59, %v617_v59 }
 0x197   : > { %2431 = vrcp.f32 %v586_v20  ;;  %v2430_v28 = vpop.eup %2429  ;;  %v590_v29 = vadd.f32 1.0, %v2428_v26 }
 0x198   : > { %v2319_v61 = vpack.i.bf16 %v3170_v60, %v617_v59  ;;  %2433 = vpow2.f32 %v1994_v22  ;;  %v588_v31 = vadd.f32 1.0, %v2430_v28  ;;  %v666_v51 = vmul.f32 %v3170_v60, %v3170_v60 }
 0x199   : > { %2435 = vrcp.f32 %v587_v24  ;;  %v3192_v52 = vadd.f32 -1.0, %v665_v44 }
 0x19a   : > { %2320 = vperm.xlu1 %2318, %v2319_v61   ;;  %2437 = vpow2.f32 %v1996_v27  ;;  %v3200_v58 = vadd.f32 -1.0, %v666_v51 }
 0x19b   : > { %2439 = vrcp.f32 %v590_v29  ;;  %vm683_vm2 = vcmp.eq.f32.partialorder %v3192_v52, inf  ;;  %vm685_vm4 = vcmp.eq.f32.partialorder %v3192_v52, 0.0 }
 0x19c   : > { %2441 = vrcp.f32 %v588_v31  ;;  %vm690_vm5 = vcmp.eq.f32.partialorder %v3200_v58, inf  ;;  %vm692_vm6 = vcmp.eq.f32.partialorder %v3200_v58, 0.0 }
 0x1a1   : > { %v2432_v30 = vpop.eup %2431 }
 0x1a2   : > { %v2434_v32 = vpop.eup %2433  ;;  %v611_v33 = vmul.f32 %v2432_v30, %v3166_v54 }
 0x1a3   : > { %v589_v34 = vadd.f32 1.0, %v2434_v32  ;;  %v2436_v38 = vpop.eup %2435 }
 0x1a4   : > { %v3180_v35 = vadd.f32 1.1, %v611_v33  ;;  %v2438_v39 = vpop.eup %2437  ;;  %v612_v43 = vmul.f32 %v2436_v38, %v3166_v54  ;;  %v686_v33 = vand.u32 2147483648, %v3192_v52 }
 0x1a5   : > { %2443 = vrcp.f32 %v589_v34  ;;  %v2440_v45 = vpop.eup %2439  ;;  %v591_v46 = vadd.f32 1.0, %v2438_v39 }
 0x1a6   : > { %v667_v42 = vmul.f32 %v3180_v35, %v3180_v35  ;;  %v2442_v48 = vpop.eup %2441  ;;  %v3187_v49 = vadd.f32 1.1, %v612_v43  ;;  %v615_v50 = vmul.f32 %v2440_v45, %v3166_v54 }
 0x1a7   : > { %2445 = vrcp.f32 %v591_v46  ;;  %v613_v53 = vmul.f32 %v2442_v48, %v3166_v54 }
 0x1a8   : > { %v3185_v47 = vadd.f32 -1.0, %v667_v42  ;;  %v668_v56 = vmul.f32 %v3187_v49, %v3187_v49  ;;  %v3198_v57 = vadd.f32 1.1, %v615_v50 }
 0x1a9   : > { %v3203_v59 = vadd.f32 1.1, %v613_v53 }
 0x1aa   : > { %2447 = vrsqrt.f32 %v3185_v47  ;;  %v3206_v61 = vadd.f32 -1.0, %v668_v56  ;;  %v671_v62 = vmul.f32 %v3198_v57, %v3198_v57  ;;  %vm697_vm1 = vcmp.eq.f32.partialorder %v3185_v47, inf }
 0x1ab   : > { %2449 = vrsqrt.f32 %v3192_v52  ;;  %v669_v0 = vmul.f32 %v3203_v59, %v3203_v59  ;;  %v700_v29 = vand.u32 2147483648, %v3185_v47  ;;  %vm699_vm3 = vcmp.eq.f32.partialorder %v3185_v47, 0.0 }
 0x1ac   : > { %2451 = vrsqrt.f32 %v3200_v58  ;;  %v3215_v5 = vadd.f32 -1.0, %v671_v62  ;;  %v2411_v62 = vld [vmem:[#allocation9 + $0x60] ss:$8 sps:$4 sm:$0xff]   ;;  %vm704_vm7 = vcmp.eq.f32.partialorder %v3206_v61, inf  ;;  %vm706_vm8 = vcmp.eq.f32.partialorder %v3206_v61, 0.0 }
 0x1ad   : > { %2453 = vrsqrt.f32 %v3206_v61  ;;  %v3218_v10 = vadd.f32 -1.0, %v669_v0 }
 0x1ae   : > { %vm725_vm9 = vcmp.eq.f32.partialorder %v3215_v5, inf  ;;  %vm727_vm10 = vcmp.eq.f32.partialorder %v3215_v5, 0.0 }
 0x1af   : > { %v2444_v55 = vpop.eup %2443  ;;  %vm711_vm11 = vcmp.eq.f32.partialorder %v3218_v10, inf  ;;  %vm713_vm12 = vcmp.eq.f32.partialorder %v3218_v10, 0.0 }
 0x1b0   : > { %v614_v60 = vmul.f32 %v2444_v55, %v3166_v54  ;;  %v693_v55 = vand.u32 2147483648, %v3200_v58 }
 0x1b1   : > { %v2446_v4 = vpop.eup %2445 }
 0x1b2   : > { %v3213_v1 = vadd.f32 1.1, %v614_v60  ;;  %v616_v16 = vmul.f32 %v2446_v4, %v3166_v54  ;;  %v2409_v60 = vld [vmem:[#allocation9 + $0x64] ss:$8 sps:$4 sm:$0xff]  }
 0x1b3   : > { %1009 = vmatprep.subr.bf16.mxu1 %v2409_v60 }
 0x1b4   : > { %v2448_v7 = vpop.eup %2447  ;;  %v670_v11 = vmul.f32 %v3213_v1, %v3213_v1  ;;  %v3230_v28 = vadd.f32 1.1, %v616_v16  ;;  %1010 = vmatpush1.bf16.msra.mxu1 %v2411_v62 }
 0x1b5   : > { %v2450_v8 = vpop.eup %2449  ;;  %v696_v22 = vmul.f32 %v2448_v7, %v3185_v47 }
 0x1b6   : > { %v682_v23 = vmul.f32 %v2450_v8, %v3192_v52  ;;  %v2452_v24 = vpop.eup %2451  ;;  %v3226_v26 = vadd.f32 -1.0, %v670_v11  ;;  %v672_v42 = vmul.f32 %v3230_v28, %v3230_v28  ;;  %v2414_v11 = vld [vmem:[#allocation9 + $0x70] ss:$8 sps:$4 sm:$0xff]  }
 0x1b7   : > { %v698_v54 = vsel %vm697_vm1, %v3185_v47, %v696_v22  ;;  %v689_v31 = vmul.f32 %v2452_v24, %v3200_v58  ;;  %v2454_v32 = vpop.eup %2453  ;;  %v728_v24 = vand.u32 2147483648, %v3215_v5 }
 0x1b8   : > { %v684_v30 = vsel %vm683_vm2, %v3192_v52, %v682_v23  ;;  %v701_v39 = vsel %vm699_vm3, %v700_v29, %v698_v54  ;;  %v703_v52 = vmul.f32 %v2454_v32, %v3206_v61  ;;  %v3248_v56 = vadd.f32 -1.0, %v672_v42 }
 0x1b9   : > { %v687_v48 = vsel %vm685_vm4, %v686_v33, %v684_v30  ;;  %v691_v51 = vsel %vm690_vm5, %v3200_v58, %v689_v31  ;;  %v707_v58 = vand.u32 2147483648, %v3206_v61  ;;  %v2324_v29 = vpack.i.bf16 %v3187_v49, %v3180_v35 }
 0x1ba   : > { %vm718_vm13 = vcmp.eq.f32.partialorder %v3226_v26, inf  ;;  %v2334_v35 = vpack.i.bf16 %v3230_v28, %v3198_v57  ;;  %vm720_vm14 = vcmp.eq.f32.partialorder %v3226_v26, 0.0  ;;  %vm732_vm15 = vcmp.eq.f32.partialorder %v3248_v56, inf }
 0x1bb   : > { %vm734_vm1 = vcmp.eq.f32.partialorder %v3248_v56, 0.0 }
 0x207   : > { %v646_v63 = vpop.xlane.xlu1 %645 }
 0x208   : > { %v659_v2 = vmax.f32 %v646_v63, 1e-08  ;;  %v642_v3 = vpop.xlane.xlu0 %641 }
 0x209   : > { %v657_v6 = vmax.f32 %v642_v3, 1e-08 }
 0x20a   : > { %2455 = vrsqrt.f32 %v659_v2  ;;  %v694_v2 = vsel %vm692_vm6, %v693_v55, %v691_v51 }
 0x20b   : > { %2457 = vrsqrt.f32 %v657_v6  ;;  %v648_v9 = vpop.xlane.xlu1 %647  ;;  %v705_v6 = vsel %vm704_vm7, %v3206_v61, %v703_v52 }
 0x20c   : > { %v644_v15 = vpop.xlane.xlu0 %643  ;;  %v660_v18 = vmax.f32 %v648_v9, 1e-08  ;;  %2459 = vrsqrt.f32 %v3215_v5  ;;  %v2412_v9 = vld [vmem:[#allocation9 + $0x74] ss:$8 sps:$4 sm:$0xff]  }
 0x20d   : > { %v658_v20 = vmax.f32 %v644_v15, 1e-08  ;;  %v708_v15 = vsel %vm706_vm8, %v707_v58, %v705_v6  ;;  %1011 = vmatprep.subr.bf16.mxu1 %v2412_v9 }
 0x20e   : > { %1012 = vmatpush1.bf16.msra.mxu1 %v2414_v11 }
 0x20f   : > { %2461 = vrsqrt.f32 %v658_v20 }
 0x210   : > { %v650_v27 = vpop.xlane.xlu0 %649  ;;  %2463 = vrsqrt.f32 %v3218_v10 }
 0x211   : > { %2465 = vrsqrt.f32 %v660_v18  ;;  %v661_v44 = vmax.f32 %v650_v27, 1e-08 }
 0x212   : > { %2467 = vrsqrt.f32 %v3226_v26  ;;  %v652_v47 = vpop.xlane.xlu1 %651 }
 0x213   : > { %v662_v0 = vmax.f32 %v652_v47, 1e-08 }
 0x214   : > { %v2456_v34 = vpop.eup %2455  ;;  %v654_v38 = vpop.xlane.xlu0 %653 }
 0x215   : > { %v2458_v43 = vpop.eup %2457  ;;  %v663_v45 = vmax.f32 %v654_v38, 1e-08  ;;  %v747_v46 = vmul.f32 %v2456_v34, %v701_v39  ;;  %v714_v34 = vand.u32 2147483648, %v3218_v10 }
 0x216   : > { %v745_v50 = vmul.f32 %v2458_v43, %v687_v48  ;;  %v2460_v53 = vpop.eup %2459  ;;  %v656_v18 = vpop.xlane.xlu1 %655  ;;  %v721_v43 = vand.u32 2147483648, %v3226_v26  ;;  %v735_v48 = vand.u32 2147483648, %v3248_v56 }
 0x217   : > { %2469 = vrsqrt.f32 %v663_v45  ;;  %765 = vperm.xlu1 %2318, %v747_v46   ;;  %v724_v7 = vmul.f32 %v2460_v53, %v3215_v5  ;;  %v664_v27 = vmax.f32 %v656_v18, 1e-08  ;;  %v2329_v46 = vpack.i.bf16 %v3213_v1, %v3203_v59 }
 0x218   : > { %755 = vperm.xlu0 %2317, %v745_v50   ;;  %2471 = vrsqrt.f32 %v661_v44 }
 0x219   : > { %v2462_v63 = vpop.eup %2461  ;;  %2473 = vrsqrt.f32 %v3248_v56  ;;  %v726_v22 = vsel %vm725_vm9, %v3215_v5, %v724_v7 }
 0x21a   : > { %v2464_v3 = vpop.eup %2463  ;;  %v746_v4 = vmul.f32 %v2462_v63, %v694_v2  ;;  %2475 = vrsqrt.f32 %v662_v0  ;;  %v729_v54 = vsel %vm727_vm10, %v728_v24, %v726_v22  ;;  %v2321_v50 = vpop.permute.xlu1 %2320 }
 0x21b   : > { %v2466_v8 = vpop.eup %2465  ;;  %v710_v23 = vmul.f32 %v2464_v3, %v3218_v10  ;;  %2477 = vrsqrt.f32 %v664_v27  ;;  %v2323_v60 = vunpack.i.h.bf16 %v2321_v50  ;;  %v2322_v59 = vunpack.i.l.bf16 %v2321_v50 }
 0x21c   : > { %760 = vperm.xlu1 %2318, %v746_v4   ;;  %v2468_v16 = vpop.eup %2467  ;;  %v748_v20 = vmul.f32 %v2466_v8, %v708_v15 }
 0x21d   : > { %v712_v31 = vsel %vm711_vm11, %v3218_v10, %v710_v23  ;;  %v717_v32 = vmul.f32 %v2468_v16, %v3226_v26 }
 0x21e   : > { %v715_v5 = vsel %vm713_vm12, %v714_v34, %v712_v31 }
 0x21f   : > { %v719_v49 = vsel %vm718_vm13, %v3226_v26, %v717_v32  ;;  %v908_v32 = vshrl.u32 %v388_v13, 7 }
 0x220   : > { %770 = vperm.xlu1 %2318, %v748_v20   ;;  %v722_v44 = vsel %vm720_vm14, %v721_v43, %v719_v49 }
 0x221   : > { %v2470_v61 = vpop.eup %2469 }
 0x222   : > { %v751_v30 = vmul.f32 %v2470_v61, %v729_v54  ;;  %v2472_v33 = vpop.eup %2471 }
 0x223   : > { %v2474_v38 = vpop.eup %2473  ;;  %v749_v39 = vmul.f32 %v2472_v33, %v715_v5  ;;  %v909_v33 = vsub.s32 0, %v908_v32 }
 0x224   : > { %2325 = vperm.xlu1 %2318, %v2324_v29   ;;  %785 = vperm.xlu0 %2317, %v751_v30   ;;  %v2476_v42 = vpop.eup %2475  ;;  %v731_v45 = vmul.f32 %v2474_v38, %v3248_v56 }
 0x225   : > { %v750_v10 = vmul.f32 %v2476_v42, %v722_v44  ;;  %v2478_v28 = vpop.eup %2477 }
 0x226   : > { %v733_v57 = vsel %vm732_vm15, %v3248_v56, %v731_v45 }
 0x227   : > { %v736_v26 = vsel %vm734_vm1, %v735_v48, %v733_v57 }
 0x228   : > { %775 = vperm.xlu1 %2318, %v749_v39   ;;  %2335 = vperm.xlu0 %2317, %v2334_v35   ;;  %v752_v47 = vmul.f32 %v2478_v28, %v736_v26 }
 0x22c   : > { %780 = vperm.xlu1 %2318, %v750_v10  }
 0x230   : > { %2330 = vperm.xlu1 %2318, %v2329_v46  }
 0x234   : > { %790 = vperm.xlu1 %2318, %v752_v47  }
 0x296   : > { %v766_v51 = vpop.permute.xlu1 %765 }
 0x297   : > { %v756_v52 = vpop.permute.xlu0 %755  ;;  %v795_v2 = vmul.f32 %v766_v51, %v3124_v17 }
 0x298   : > { %v793_v53 = vmul.f32 %v756_v52, %v3126_v19 }
 0x29a   : > { %v841_v62 = vsel %vm390_vm0, %v2322_v59, %v793_v53 }
 0x29b   : > { %v761_v55 = vpop.permute.xlu1 %760 }
 0x29c   : > { %v794_v1 = vmul.f32 %v761_v55, %v3134_v25 }
 0x29e   : > { %v842_v56 = vsel %vm390_vm0, %v2323_v60, %v794_v1 }
 0x29f   : > { %v771_v63 = vpop.permute.xlu1 %770  ;;  %v849_v0 = vpack.c.bf16 %v842_v56, %v841_v62 }
 0x2a0   : > { %v796_v25 = vmul.f32 %v771_v63, %v3128_v21 }
 0x2a1   : > { %2122 = vst [vmem:[%s3288_s25] sm:$0xff] %v849_v0   ;;  %1030 = vmatmul.mubr.bf16.vlgmr.msra.gmra.mrb[0].mxu1 %v849_v0 }
 0x2a2   : > { %1039 = vmatprep.mubr.bf16.mxu1 %v2850_v12 }
 0x2a3   : > { %v2326_v19 = vpop.permute.xlu1 %2325  ;;  %v786_v9 = vpop.permute.xlu0 %785 }
 0x2a4   : > { %v2328_v3 = vunpack.i.h.bf16 %v2326_v19  ;;  %v2327_v4 = vunpack.i.l.bf16 %v2326_v19  ;;  %v799_v54 = vmul.f32 %v786_v9, %v3146_v36  ;;  %v905_v36 = vld [vmem:[%s3851_s5] sm:$0x3] }
 0x2a5   : > { %v3319_v34 = vrot.slane %v905_v36, %v909_v33 }
 0x2a6   : > { %v843_v6 = vsel %vm390_vm0, %v2327_v4, %v795_v2  ;;  %v844_v7 = vsel %vm390_vm0, %v2328_v3, %v796_v25 }
 0x2a7   : > { %v776_v8 = vpop.permute.xlu1 %775  ;;  %v850_v58 = vpack.c.bf16 %v844_v7, %v843_v6  ;;  %v2336_v17 = vpop.permute.xlu0 %2335 }
 0x2a8   : > { %v797_v21 = vmul.f32 %v776_v8, %v3148_v37  ;;  %v2337_v22 = vunpack.i.l.bf16 %v2336_v17  ;;  %v2338_v29 = vunpack.i.h.bf16 %v2336_v17 }
 0x2a9   : > { %2178 = vst [vmem:[%s3288_s25 + $0x8] sm:$0xff] %v850_v58   ;;  %1040 = vmatmul.mubr.bf16.gmra.mrb[4].mxu1 %v850_v58 }
 0x2aa   : > { %1049 = vmatprep.mubr.bf16.mxu1 %v2850_v12  ;;  %v847_v37 = vsel %vm390_vm0, %v2337_v22, %v799_v54 }
 0x2ab   : > { %v781_v11 = vpop.permute.xlu1 %780 }
 0x2ac   : > { %v798_v16 = vmul.f32 %v781_v11, %v3152_v41 }
 0x2af   : > { %v2331_v15 = vpop.permute.xlu1 %2330 }
 0x2b0   : > { %v2333_v18 = vunpack.i.h.bf16 %v2331_v15  ;;  %v2332_v20 = vunpack.i.l.bf16 %v2331_v15 }
 0x2b2   : > { %v845_v23 = vsel %vm390_vm0, %v2332_v20, %v797_v21  ;;  %v846_v24 = vsel %vm390_vm0, %v2333_v18, %v798_v16 }
 0x2b3   : > { %v791_v61 = vpop.permute.xlu1 %790  ;;  %v851_v27 = vpack.c.bf16 %v846_v24, %v845_v23 }
 0x2b4   : > { %v800_v30 = vmul.f32 %v791_v61, %v3150_v40  ;;  %v913_v40 = vsub.s32 1, %v908_v32 }
 0x2b5   : > { %2179 = vst [vmem:[%s3288_s25 + $0x10] sm:$0xff] %v851_v27   ;;  %1050 = vmatmul.mubr.bf16.gmra.mrb[8].mxu1 %v851_v27 }
 0x2b6   : > { %1059 = vmatprep.mubr.bf16.mxu1 %v2850_v12  ;;  %v848_v41 = vsel %vm390_vm0, %v2338_v29, %v800_v30  ;;  %v3321_v12 = vrot.slane %v905_v36, %v913_v40 }
 0x2b7   : > { %v852_v31 = vpack.c.bf16 %v848_v41, %v847_v37 }
 0x2b9   : > { %2180 = vst [vmem:[%s3288_s25 + $0x18] sm:$0xff] %v852_v31   ;;  %s2710_s25 = sshll.u32 %s2851_s19, 4  ;;  %s2711_s25 = int_to_ptr.vmem [resolvable:$false] %s2710_s25 }
 0x2ba   : > { %s2712_s15 = scalar_lea.vmem %s2711_s25, 1024  ;;  %p2713_p2 = scmp.lt.s32.totalorder %s3650_s10, %s2711_s25 }
 0x2bb   : > { %p2714_p6 = scmp.lt.s32.totalorder %s2712_s15, %s2706_s13 }
 0x2bd   : > { %1060 = vmatmul.mubr.bf16.gmra.mrb[12].mxu1 %v852_v31  ;;  %p2715_p8 = por %p2714_p6, %p2713_p2 }
 0x2bf   : > { %p2716_p12 = pnand %p2715_p8, %p2709_p9 }
 0x374   : > { %v1031_v5 = vpop.f32.mrb[0].mxu1 }
 0x375   : > { %v3324_v38 = vadd.f32 %v1031_v5, %v3319_v34  ;;  %v1033_v39 = vpop.f32.mrb[1].mxu1 }
 0x376   : > { %v3327_v35 = vadd.f32 %v1033_v39, %v3321_v12  ;;  %v1035_v49 = vpop.f32.mrb[2].mxu1 }
 0x377   : > { %v3330_v13 = vadd.f32 %v1035_v49, %v3319_v34  ;;  %v1037_v42 = vpop.f32.mrb[3].mxu1  ;;  %v1136_v43 = vsel %vm390_vm0, 0.0, %v3324_v38  ;;  %v2030_v26 = vmul.f32 -1.442695, %v3324_v38 }
 0x378   : > { %v3336_v44 = vadd.f32 %v1037_v42, %v3321_v12  ;;  %v1144_v10 = vmul.f32 %v1136_v43, %v1136_v43  ;;  %v1474_v45 = vsel %vm390_vm0, 0.0, %v3327_v35  ;;  %v2055_v50 = vmul.f32 -1.442695, %v3327_v35 }
 0x379   : > { %v1482_v46 = vmul.f32 %v1474_v45, %v1474_v45  ;;  %v1137_v28 = vsel %vm390_vm0, 0.0, %v3330_v13  ;;  %v2031_v59 = vmul.f32 -1.442695, %v3330_v13  ;;  %2479 = vpow2.f32 %v2030_v26 }
 0x37a   : > { %1152 = vadd.xlane.f32.xlu1 %v1144_v10  ;;  %v1475_v57 = vsel %vm390_vm0, 0.0, %v3336_v44  ;;  %v1145_v53 = vmul.f32 %v1137_v28, %v1137_v28  ;;  %2481 = vpow2.f32 %v2055_v50  ;;  %v2056_v0 = vmul.f32 -1.442695, %v3336_v44 }
 0x37b   : > { %1490 = vadd.xlane.f32.xlu0 %v1482_v46  ;;  %v1483_v48 = vmul.f32 %v1475_v57, %v1475_v57  ;;  %2483 = vpow2.f32 %v2031_v59 }
 0x37c   : > { %v1041_v47 = vpop.f32.mrb[4].mxu1  ;;  %2485 = vpow2.f32 %v2056_v0 }
 0x37d   : > { %v3350_v51 = vadd.f32 %v1041_v47, %v3319_v34  ;;  %v1043_v52 = vpop.f32.mrb[5].mxu1 }
 0x37e   : > { %v3353_v55 = vadd.f32 %v1043_v52, %v3321_v12  ;;  %v1045_v60 = vpop.f32.mrb[6].mxu1  ;;  %1492 = vadd.xlane.f32.xlu1 %v1483_v48 }
 0x37f   : > { %v3357_v1 = vadd.f32 %v1045_v60, %v3319_v34  ;;  %v1047_v62 = vpop.f32.mrb[7].mxu1  ;;  %1154 = vadd.xlane.f32.xlu0 %v1145_v53  ;;  %v1138_v56 = vsel %vm390_vm0, 0.0, %v3350_v51  ;;  %v2032_v4 = vmul.f32 -1.442695, %v3350_v51 }
 0x380   : > { %v1146_v63 = vmul.f32 %v1138_v56, %v1138_v56  ;;  %v3364_v19 = vadd.f32 %v1047_v62, %v3321_v12  ;;  %v1476_v3 = vsel %vm390_vm0, 0.0, %v3353_v55  ;;  %v2057_v58 = vmul.f32 -1.442695, %v3353_v55 }
 0x381   : > { %v1139_v2 = vsel %vm390_vm0, 0.0, %v3357_v1  ;;  %v2033_v6 = vmul.f32 -1.442695, %v3357_v1  ;;  %v1484_v8 = vmul.f32 %v1476_v3, %v1476_v3  ;;  %2487 = vpow2.f32 %v2032_v4 }
 0x382   : > { %v1147_v25 = vmul.f32 %v1139_v2, %v1139_v2  ;;  %v2058_v7 = vmul.f32 -1.442695, %v3364_v19  ;;  %v1477_v9 = vsel %vm390_vm0, 0.0, %v3364_v19 }
 0x383   : > { %1156 = vadd.xlane.f32.xlu0 %v1146_v63  ;;  %2489 = vpow2.f32 %v2033_v6  ;;  %v1485_v21 = vmul.f32 %v1477_v9, %v1477_v9  ;;  %v2480_v16 = vpop.eup %2479 }
 0x384   : > { %1158 = vadd.xlane.f32.xlu1 %v1147_v25  ;;  %2491 = vpow2.f32 %v2058_v7  ;;  %v2482_v22 = vpop.eup %2481  ;;  %v1095_v37 = vadd.f32 1.0, %v2480_v16 }
 0x385   : > { %2493 = vpow2.f32 %v2057_v58  ;;  %v2484_v30 = vpop.eup %2483  ;;  %v1433_v31 = vadd.f32 1.0, %v2482_v22 }
 0x386   : > { %v2486_v33 = vpop.eup %2485  ;;  %v1096_v39 = vadd.f32 1.0, %v2484_v30 }
 0x387   : > { %1494 = vadd.xlane.f32.xlu0 %v1484_v8  ;;  %v1434_v57 = vadd.f32 1.0, %v2486_v33 }
 0x388   : > { %v1051_v11 = vpop.f32.mrb[8].mxu1 }
 0x389   : > { %v3380_v17 = vadd.f32 %v1051_v11, %v3319_v34  ;;  %v1053_v15 = vpop.f32.mrb[9].mxu1 }
 0x38a   : > { %v3383_v18 = vadd.f32 %v1053_v15, %v3321_v12  ;;  %v1055_v20 = vpop.f32.mrb[10].mxu1 }
 0x38b   : > { %v2034_v23 = vmul.f32 -1.442695, %v3380_v17  ;;  %v3387_v24 = vadd.f32 %v1055_v20, %v3319_v34  ;;  %v1057_v61 = vpop.f32.mrb[11].mxu1  ;;  %1496 = vadd.xlane.f32.xlu0 %v1485_v21  ;;  %v1140_v27 = vsel %vm390_vm0, 0.0, %v3380_v17  ;;  %v2488_v42 = vpop.eup %2487 }
 0x38c   : > { %v3393_v54 = vadd.f32 %v1057_v61, %v3321_v12  ;;  %v1148_v29 = vmul.f32 %v1140_v27, %v1140_v27  ;;  %v1478_v41 = vsel %vm390_vm0, 0.0, %v3383_v18  ;;  %v1097_v62 = vadd.f32 1.0, %v2488_v42 }
 0x38d   : > { %2495 = vpow2.f32 %v2034_v23  ;;  %v1486_v32 = vmul.f32 %v1478_v41, %v1478_v41  ;;  %v2035_v36 = vmul.f32 -1.442695, %v3387_v24  ;;  %v1141_v5 = vsel %vm390_vm0, 0.0, %v3387_v24  ;;  %v2490_v46 = vpop.eup %2489 }
 0x38e   : > { %v1479_v40 = vsel %vm390_vm0, 0.0, %v3393_v54  ;;  %2497 = vrcp.f32 %v1095_v37  ;;  %v1149_v26 = vmul.f32 %v1141_v5, %v1141_v5  ;;  %v2492_v47 = vpop.eup %2491  ;;  %v1098_v0 = vadd.f32 1.0, %v2490_v46 }
 0x38f   : > { %1160 = vadd.xlane.f32.xlu0 %v1148_v29  ;;  %1498 = vadd.xlane.f32.xlu1 %v1486_v32  ;;  %v1487_v45 = vmul.f32 %v1479_v40, %v1479_v40  ;;  %2499 = vrcp.f32 %v1433_v31  ;;  %v2494_v59 = vpop.eup %2493  ;;  %v1436_v25 = vadd.f32 1.0, %v2492_v47  ;;  %v1119_v29 = vstv %s2029_s24 }
 0x390   : > { %v1061_v49 = vpop.f32.mrb[12].mxu1  ;;  %2501 = vpow2.f32 %v2035_v36  ;;  %v1435_v7 = vadd.f32 1.0, %v2494_v59  ;;  %v3431_v37 = vstv %s2054_s16 }
 0x391   : > { %v3406_v43 = vadd.f32 %v1061_v49, %v3319_v34  ;;  %v1063_v10 = vpop.f32.mrb[13].mxu1  ;;  %2503 = vrcp.f32 %v1096_v39 }
 0x392   : > { %v3409_v28 = vadd.f32 %v1063_v10, %v3321_v12  ;;  %v1065_v48 = vpop.f32.mrb[14].mxu1 }
 0x393   : > { %v2036_v50 = vmul.f32 -1.442695, %v3406_v43  ;;  %v3413_v52 = vadd.f32 %v1065_v48, %v3319_v34  ;;  %1500 = vadd.xlane.f32.xlu0 %v1487_v45  ;;  %v1067_v53 = vpop.f32.mrb[15].mxu1  ;;  %v1142_v60 = vsel %vm390_vm0, 0.0, %v3406_v43  ;;  %1162 = vadd.xlane.f32.xlu1 %v1149_v26 }
 0x394   : > { %v3419_v56 = vadd.f32 %v1067_v53, %v3321_v12  ;;  %v1150_v63 = vmul.f32 %v1142_v60, %v1142_v60  ;;  %v1480_v12 = vsel %vm390_vm0, 0.0, %v3409_v28 }
 0x395   : > { %2505 = vpow2.f32 %v2036_v50  ;;  %v2037_v2 = vmul.f32 -1.442695, %v3413_v52  ;;  %v1143_v34 = vsel %vm390_vm0, 0.0, %v3413_v52  ;;  %v1488_v9 = vmul.f32 %v1480_v12, %v1480_v12 }
 0x396   : > { %2507 = vrcp.f32 %v1434_v57  ;;  %v1151_v3 = vmul.f32 %v1143_v34, %v1143_v34  ;;  %v1481_v4 = vsel %vm390_vm0, 0.0, %v3419_v56 }
 0x397   : > { %v2496_v6 = vpop.eup %2495  ;;  %2509 = vpow2.f32 %v2037_v2  ;;  %1164 = vadd.xlane.f32.xlu0 %v1150_v63  ;;  %v1489_v58 = vmul.f32 %v1481_v4, %v1481_v4 }
 0x398   : > { %2511 = vrcp.f32 %v1097_v62  ;;  %v1099_v8 = vadd.f32 1.0, %v2496_v6  ;;  %1166 = vadd.xlane.f32.xlu1 %v1151_v3  ;;  %v2498_v11 = vpop.eup %2497 }
 0x399   : > { %2513 = vrcp.f32 %v1098_v0  ;;  %v2500_v15 = vpop.eup %2499  ;;  %v1120_v40 = vmul.f32 %v2498_v11, %v1119_v29 }
 0x39a   : > { %2515 = vrcp.f32 %v1436_v25  ;;  %v2502_v21 = vpop.eup %2501  ;;  %v1458_v39 = vmul.f32 %v2500_v15, %v3431_v37 }
 0x39b   : > { %2517 = vrcp.f32 %v1435_v7  ;;  %1504 = vadd.xlane.f32.xlu0 %v1489_v58  ;;  %v2504_v16 = vpop.eup %2503  ;;  %v1100_v20 = vadd.f32 1.0, %v2502_v21  ;;  %v1128_v57 = vadd.f32 1.1, %v1120_v40 }
 0x39c   : > { %2519 = vrcp.f32 %v1099_v8  ;;  %1502 = vadd.xlane.f32.xlu1 %v1488_v9  ;;  %v1121_v31 = vmul.f32 %v2504_v16, %v1119_v29  ;;  %v1466_v26 = vadd.f32 1.1, %v1458_v39 }
 0x39d   : > { %2521 = vrcp.f32 %v1100_v20  ;;  %v1264_v34 = vsub.f32 0.0, %v1128_v57 }
 0x39e   : > { %v3435_v42 = vadd.f32 1.1, %v1121_v31  ;;  %v2060_v31 = vmul.f32 -1.442695, %v3393_v54 }
 0x39f   : > { %v2506_v22 = vpop.eup %2505 }
 0x3a0   : > { %v2508_v23 = vpop.eup %2507  ;;  %v1101_v61 = vadd.f32 1.0, %v2506_v22  ;;  %v1265_v60 = vsub.f32 0.0, %v3435_v42 }
 0x3a1   : > { %v2510_v27 = vpop.eup %2509  ;;  %v1459_v33 = vmul.f32 %v2508_v23, %v3431_v37 }
 0x3a2   : > { %v2512_v30 = vpop.eup %2511  ;;  %2523 = vrcp.f32 %v1101_v61  ;;  %v1102_v41 = vadd.f32 1.0, %v2510_v27  ;;  %v2344_v8 = vpack.i.bf16 %v1265_v60, %v1264_v34 }
 0x3a3   : > { %v2514_v32 = vpop.eup %2513  ;;  %v1467_v10 = vadd.f32 1.1, %v1459_v33  ;;  %v1122_v50 = vmul.f32 %v2512_v30, %v1119_v29  ;;  %v2062_v33 = vmul.f32 -1.442695, %v3419_v56 }
 0x3a4   : > { %v2516_v36 = vpop.eup %2515  ;;  %2525 = vrcp.f32 %v1102_v41  ;;  %v1123_v46 = vmul.f32 %v2514_v32, %v1119_v29  ;;  %v2061_v32 = vmul.f32 -1.442695, %v3409_v28 }
 0x3a5   : > { %v2518_v5 = vpop.eup %2517  ;;  %v1461_v45 = vmul.f32 %v2516_v36, %v3431_v37  ;;  %v2339_v59 = vpack.i.bf16 %v1467_v10, %v1466_v26  ;;  %v1130_v6 = vadd.f32 1.1, %v1122_v50  ;;  %v1515_v50 = vmul.f32 %v1467_v10, %v1467_v10 }
 0x3a6   : > { %v2520_v49 = vpop.eup %2519  ;;  %v1460_v48 = vmul.f32 %v2518_v5, %v3431_v37  ;;  %v1131_v0 = vadd.f32 1.1, %v1123_v46  ;;  %v1514_v46 = vmul.f32 %v1466_v26, %v1466_v26 }
 0x3a7   : > { %v1124_v47 = vmul.f32 %v2520_v49, %v1119_v29  ;;  %v2522_v53 = vpop.eup %2521  ;;  %v3440_v62 = vadd.f32 1.1, %v1461_v45  ;;  %v1266_v16 = vsub.f32 0.0, %v1130_v6  ;;  %v1176_v45 = vmul.f32 %v1128_v57, %v1128_v57 }
 0x3a8   : > { %v1125_v63 = vmul.f32 %v2522_v53, %v1119_v29  ;;  %v1468_v25 = vadd.f32 1.1, %v1460_v48  ;;  %v1267_v11 = vsub.f32 0.0, %v1131_v0  ;;  %v3461_v60 = vadd.f32 -1.0, %v1514_v46 }
 0x3a9   : > { %v3442_v3 = vadd.f32 1.1, %v1124_v47  ;;  %v3459_v53 = vadd.f32 -1.0, %v1176_v45  ;;  %v3465_v34 = vadd.f32 -1.0, %v1515_v50  ;;  %v1179_v26 = vmul.f32 %v1131_v0, %v1131_v0 }
 0x3aa   : > { %v3444_v4 = vadd.f32 1.1, %v1125_v63  ;;  %v2349_v58 = vpack.i.bf16 %v3440_v62, %v1468_v25  ;;  %v2354_v61 = vpack.i.bf16 %v1267_v11, %v1266_v16  ;;  %vm1532_vm4 = vcmp.eq.f32.partialorder %v3461_v60, inf }
 0x3ab   : > { %v1268_v21 = vsub.f32 0.0, %v3442_v3  ;;  %vm1194_vm2 = vcmp.eq.f32.partialorder %v3459_v53, inf  ;;  %vm1196_vm3 = vcmp.eq.f32.partialorder %v3459_v53, 0.0  ;;  %vm1534_vm5 = vcmp.eq.f32.partialorder %v3461_v60, 0.0 }
 0x3ac   : > { %v2524_v2 = vpop.eup %2523  ;;  %v1269_v9 = vsub.f32 0.0, %v3444_v4  ;;  %vm1539_vm6 = vcmp.eq.f32.partialorder %v3465_v34, inf  ;;  %vm1541_vm8 = vcmp.eq.f32.partialorder %v3465_v34, 0.0 }
 0x3ad   : > { %2340 = vperm.xlu1 %2318, %v2339_v59   ;;  %v1126_v7 = vmul.f32 %v2524_v2, %v1119_v29  ;;  %v1177_v59 = vmul.f32 %v3435_v42, %v3435_v42  ;;  %v1178_v2 = vmul.f32 %v1130_v6, %v1130_v6  ;;  %v1517_v6 = vmul.f32 %v3440_v62, %v3440_v62 }
 0x3ae   : > { %v2526_v12 = vpop.eup %2525  ;;  %v2359_v23 = vpack.i.bf16 %v1269_v9, %v1268_v21 }
 0x3af   : > { %v1127_v15 = vmul.f32 %v2526_v12, %v1119_v29  ;;  %v3449_v20 = vadd.f32 1.1, %v1126_v7  ;;  %v2059_v29 = vmul.f32 -1.442695, %v3383_v18  ;;  %v3468_v57 = vadd.f32 -1.0, %v1177_v59 }
 0x3b0   : > { %v3471_v7 = vadd.f32 -1.0, %v1178_v2 }
 0x3b1   : > { %2345 = vperm.xlu1 %2318, %v2344_v8   ;;  %2350 = vperm.xlu0 %2317, %v2349_v58   ;;  %v3451_v22 = vadd.f32 1.1, %v1127_v15  ;;  %v1270_v30 = vsub.f32 0.0, %v3449_v20  ;;  %2527 = vpow2.f32 %v2059_v29  ;;  %v1516_v8 = vmul.f32 %v1468_v25, %v1468_v25 }
 0x3b2   : > { %2529 = vpow2.f32 %v2060_v31  ;;  %v3477_v58 = vadd.f32 -1.0, %v1179_v26  ;;  %vm1201_vm7 = vcmp.eq.f32.partialorder %v3468_v57, inf  ;;  %v1181_v26 = vmul.f32 %v3444_v4, %v3444_v4 }
 0x3b3   : > { %v1271_v27 = vsub.f32 0.0, %v3451_v22  ;;  %2531 = vpow2.f32 %v2061_v32  ;;  %v3482_v11 = vadd.f32 -1.0, %v1516_v8  ;;  %v1535_v32 = vand.u32 2147483648, %v3461_v60 }
 0x3b4   : > { %2533 = vpow2.f32 %v2062_v33  ;;  %vm1203_vm9 = vcmp.eq.f32.partialorder %v3468_v57, 0.0  ;;  %vm1208_vm10 = vcmp.eq.f32.partialorder %v3471_v7, inf  ;;  %vm1210_vm11 = vcmp.eq.f32.partialorder %v3471_v7, 0.0 }
 0x3b5   : > { %2360 = vperm.xlu1 %2318, %v2359_v23   ;;  %2355 = vperm.xlu0 %2317, %v2354_v61   ;;  %v2364_v41 = vpack.i.bf16 %v1271_v27, %v1270_v30  ;;  %v3486_v23 = vadd.f32 -1.0, %v1517_v6  ;;  %v1180_v27 = vmul.f32 %v3442_v3, %v3442_v3  ;;  %v1197_v30 = vand.u32 2147483648, %v3459_v53 }
 0x3b6   : > { %v1542_v3 = vand.u32 2147483648, %v3465_v34  ;;  %vm1215_vm12 = vcmp.eq.f32.partialorder %v3477_v58, inf  ;;  %vm1217_vm13 = vcmp.eq.f32.partialorder %v3477_v58, 0.0  ;;  %vm1546_vm14 = vcmp.eq.f32.partialorder %v3482_v11, inf }
 0x3b7   : > { %v3506_v46 = vadd.f32 -1.0, %v1180_v27  ;;  %vm1548_vm15 = vcmp.eq.f32.partialorder %v3482_v11, 0.0  ;;  %vm1553_vm1 = vcmp.eq.f32.partialorder %v3486_v23, inf }
 0x3b9   : > { %2365 = vperm.xlu0 %2317, %v2364_v41  }
 0x3bb   : > { %v2528_v36 = vpop.eup %2527 }
 0x3bc   : > { %v2530_v40 = vpop.eup %2529  ;;  %v1437_v5 = vadd.f32 1.0, %v2528_v36 }
 0x3bd   : > { %v1438_v39 = vadd.f32 1.0, %v2530_v40  ;;  %v2532_v49 = vpop.eup %2531 }
 0x3be   : > { %2535 = vrcp.f32 %v1437_v5  ;;  %v2534_v48 = vpop.eup %2533  ;;  %v1439_v47 = vadd.f32 1.0, %v2532_v49 }
 0x3bf   : > { %2537 = vrcp.f32 %v1438_v39  ;;  %v1440_v63 = vadd.f32 1.0, %v2534_v48 }
 0x3c0   : > { %2539 = vrcp.f32 %v1439_v47  ;;  %v1204_v47 = vand.u32 2147483648, %v3468_v57 }
 0x3c1   : > { %2541 = vrsqrt.f32 %v3459_v53 }
 0x3c2   : > { %2543 = vrsqrt.f32 %v3461_v60 }
 0x3c3   : > { %2545 = vrcp.f32 %v1440_v63 }
 0x3c4   : > { %2547 = vrsqrt.f32 %v3465_v34 }
 0x3c5   : > { %2549 = vrsqrt.f32 %v3468_v57 }
 0x3c6   : > { %2551 = vrsqrt.f32 %v3471_v7 }
 0x3c7   : > { %2553 = vrsqrt.f32 %v3477_v58 }
 0x3c8   : > { %v2536_v10 = vpop.eup %2535 }
 0x3c9   : > { %v2538_v12 = vpop.eup %2537  ;;  %v1462_v42 = vmul.f32 %v2536_v10, %v3431_v37 }
 0x3ca   : > { %v1463_v0 = vmul.f32 %v2538_v12, %v3431_v37  ;;  %v2540_v21 = vpop.eup %2539  ;;  %v1211_v12 = vand.u32 2147483648, %v3471_v7 }
 0x3cb   : > { %v3484_v16 = vadd.f32 1.1, %v1462_v42  ;;  %v2542_v62 = vpop.eup %2541  ;;  %v1464_v63 = vmul.f32 %v2540_v21, %v3431_v37 }
 0x3cc   : > { %v2544_v41 = vpop.eup %2543  ;;  %v3493_v29 = vadd.f32 1.1, %v1463_v0  ;;  %v1193_v49 = vmul.f32 %v2542_v62, %v3459_v53 }
 0x3cd   : > { %v2546_v33 = vpop.eup %2545  ;;  %v1518_v5 = vmul.f32 %v3484_v16, %v3484_v16  ;;  %v1531_v48 = vmul.f32 %v2544_v41, %v3461_v60  ;;  %v3534_v62 = vadd.f32 1.1, %v1464_v63 }
 0x3ce   : > { %v2548_v45 = vpop.eup %2547  ;;  %v1519_v59 = vmul.f32 %v3493_v29, %v3493_v29  ;;  %v1465_v2 = vmul.f32 %v2546_v33, %v3431_v37  ;;  %v1195_v0 = vsel %vm1194_vm2, %v3459_v53, %v1193_v49  ;;  %vm1555_vm2 = vcmp.eq.f32.partialorder %v3486_v23, 0.0 }
 0x3cf   : > { %v2550_v50 = vpop.eup %2549  ;;  %v3521_v42 = vadd.f32 -1.0, %v1518_v5  ;;  %v1538_v4 = vmul.f32 %v2548_v45, %v3465_v34 }
 0x3d0   : > { %v2552_v8 = vpop.eup %2551  ;;  %v3536_v27 = vadd.f32 1.1, %v1465_v2 }
 0x3d1   : > { %v2554_v21 = vpop.eup %2553 }
 0x407   : > { %v1153_v9 = vpop.xlane.xlu1 %1152 }
 0x408   : > { %v1168_v15 = vmax.f32 %v1153_v9, 1e-08  ;;  %v1491_v25 = vpop.xlane.xlu0 %1490 }
 0x409   : > { %v1506_v61 = vmax.f32 %v1491_v25, 1e-08  ;;  %v1200_v25 = vmul.f32 %v2550_v50, %v3468_v57 }
 0x40a   : > { %2555 = vrsqrt.f32 %v1168_v15  ;;  %v1533_v15 = vsel %vm1532_vm4, %v3461_v60, %v1531_v48  ;;  %v1540_v48 = vsel %vm1539_vm6, %v3465_v34, %v1538_v4  ;;  %v1521_v60 = vmul.f32 %v3536_v27, %v3536_v27 }
 0x40b   : > { %2557 = vrsqrt.f32 %v1506_v61  ;;  %v1493_v31 = vpop.xlane.xlu1 %1492  ;;  %v3532_v61 = vadd.f32 -1.0, %v1519_v59  ;;  %v1536_v45 = vsel %vm1534_vm5, %v1535_v32, %v1533_v15  ;;  %v3549_v59 = vadd.f32 -1.0, %v1181_v26 }
 0x40c   : > { %v1507_v36 = vmax.f32 %v1493_v31, 1e-08  ;;  %v1155_v40 = vpop.xlane.xlu0 %1154  ;;  %2559 = vrsqrt.f32 %v3482_v11  ;;  %v1182_v31 = vmul.f32 %v3449_v20, %v3449_v20  ;;  %v1202_v53 = vsel %vm1201_vm7, %v3468_v57, %v1200_v25 }
 0x40d   : > { %v1169_v39 = vmax.f32 %v1155_v40, 1e-08  ;;  %v1207_v40 = vmul.f32 %v2552_v8, %v3471_v7  ;;  %v1214_v32 = vmul.f32 %v2554_v21, %v3477_v58  ;;  %v1205_v4 = vsel %vm1203_vm9, %v1204_v47, %v1202_v53 }
 0x40e   : > { %2561 = vrsqrt.f32 %v1507_v36  ;;  %v1198_v36 = vsel %vm1196_vm3, %v1197_v30, %v1195_v0  ;;  %v1520_v30 = vmul.f32 %v3534_v62, %v3534_v62  ;;  %v3560_v2 = vadd.f32 -1.0, %v1182_v31 }
 0x40f   : > { %2563 = vrsqrt.f32 %v1169_v39  ;;  %v1209_v8 = vsel %vm1208_vm10, %v3471_v7, %v1207_v40  ;;  %v1183_v25 = vmul.f32 %v3451_v22, %v3451_v22  ;;  %v3579_v21 = vadd.f32 -1.0, %v1521_v60 }
 0x410   : > { %v1157_v10 = vpop.xlane.xlu0 %1156  ;;  %2565 = vrsqrt.f32 %v3486_v23  ;;  %v1216_v57 = vsel %vm1215_vm12, %v3477_v58, %v1214_v32  ;;  %v1212_v22 = vsel %vm1210_vm11, %v1211_v12, %v1209_v8  ;;  %v1218_v31 = vand.u32 2147483648, %v3477_v58 }
 0x411   : > { %v1170_v6 = vmax.f32 %v1157_v10, 1e-08  ;;  %v1159_v37 = vpop.xlane.xlu1 %1158  ;;  %2567 = vrsqrt.f32 %v3506_v46  ;;  %v1543_v10 = vsel %vm1541_vm8, %v1542_v3, %v1540_v48  ;;  %v3577_v3 = vadd.f32 -1.0, %v1520_v30 }
 0x412   : > { %v1171_v9 = vmax.f32 %v1159_v37, 1e-08  ;;  %v1219_v7 = vsel %vm1217_vm13, %v1218_v31, %v1216_v57  ;;  %v1549_v12 = vand.u32 2147483648, %v3482_v11  ;;  %v3596_v53 = vadd.f32 -1.0, %v1183_v25 }
 0x413   : > { %2569 = vrsqrt.f32 %v1170_v6  ;;  %vm1222_vm3 = vcmp.eq.f32.partialorder %v3506_v46, inf  ;;  %v1225_v31 = vand.u32 2147483648, %v3506_v46  ;;  %vm1224_vm4 = vcmp.eq.f32.partialorder %v3506_v46, 0.0 }
 0x414   : > { %v2556_v41 = vpop.eup %2555  ;;  %2571 = vrsqrt.f32 %v1171_v9  ;;  %v1495_v33 = vpop.xlane.xlu0 %1494  ;;  %vm1560_vm5 = vcmp.eq.f32.partialorder %v3521_v42, inf  ;;  %vm1567_vm6 = vcmp.eq.f32.partialorder %v3532_v61, inf  ;;  %vm1562_vm7 = vcmp.eq.f32.partialorder %v3521_v42, 0.0 }
 0x415   : > { %v2558_v5 = vpop.eup %2557  ;;  %v1508_v39 = vmax.f32 %v1495_v33, 1e-08  ;;  %v1256_v49 = vmul.f32 %v2556_v41, %v1198_v36  ;;  %2573 = vrsqrt.f32 %v3521_v42  ;;  %vm1569_vm8 = vcmp.eq.f32.partialorder %v3532_v61, 0.0 }
 0x416   : > { %v2560_v50 = vpop.eup %2559  ;;  %v1594_v20 = vmul.f32 %v2558_v5, %v1536_v45  ;;  %vm1229_vm9 = vcmp.eq.f32.partialorder %v3549_v59, inf  ;;  %vm1236_vm10 = vcmp.eq.f32.partialorder %v3560_v2, inf  ;;  %vm1231_vm11 = vcmp.eq.f32.partialorder %v3549_v59, 0.0 }
 0x417   : > { %2575 = vrsqrt.f32 %v1508_v39  ;;  %1274 = vperm.xlu0 %2317, %v1256_v49   ;;  %v1545_v9 = vmul.f32 %v2560_v50, %v3482_v11  ;;  %vm1238_vm12 = vcmp.eq.f32.partialorder %v3560_v2, 0.0  ;;  %vm1581_vm13 = vcmp.eq.f32.partialorder %v3579_v21, inf }
 0x418   : > { %v2562_v63 = vpop.eup %2561  ;;  %v1497_v26 = vpop.xlane.xlu0 %1496  ;;  %1604 = vperm.xlu1 %2318, %v1594_v20   ;;  %2577 = vrsqrt.f32 %v3532_v61 }
 0x419   : > { %v2564_v6 = vpop.eup %2563  ;;  %v1509_v37 = vmax.f32 %v1497_v26, 1e-08  ;;  %v1595_v0 = vmul.f32 %v2562_v63, %v1543_v10  ;;  %v1547_v5 = vsel %vm1546_vm14, %v3482_v11, %v1545_v9  ;;  %vm1574_vm14 = vcmp.eq.f32.partialorder %v3577_v3, inf }
 0x41a   : > { %v2566_v15 = vpop.eup %2565  ;;  %v1257_v34 = vmul.f32 %v2564_v6, %v1205_v4  ;;  %v1550_v60 = vsel %vm1548_vm15, %v1549_v12, %v1547_v5  ;;  %vm1583_vm15 = vcmp.eq.f32.partialorder %v3579_v21, 0.0 }
 0x41b   : > { %2579 = vrsqrt.f32 %v1509_v37  ;;  %1609 = vperm.xlu0 %2317, %v1595_v0   ;;  %v2568_v47 = vpop.eup %2567  ;;  %v1552_v39 = vmul.f32 %v2566_v15, %v3486_v23  ;;  %v1556_v37 = vand.u32 2147483648, %v3486_v23 }
 0x41c   : > { %v1161_v41 = vpop.xlane.xlu0 %1160  ;;  %1279 = vperm.xlu1 %2318, %v1257_v34   ;;  %2581 = vrsqrt.f32 %v3549_v59  ;;  %v1499_v36 = vpop.xlane.xlu1 %1498  ;;  %v1221_v10 = vmul.f32 %v2568_v47, %v3506_v46 }
 0x41d   : > { %v2570_v33 = vpop.eup %2569  ;;  %v1172_v40 = vmax.f32 %v1161_v41, 1e-08  ;;  %2583 = vrsqrt.f32 %v3560_v2  ;;  %v1510_v45 = vmax.f32 %v1499_v36, 1e-08  ;;  %v1554_v26 = vsel %vm1553_vm1, %v3486_v23, %v1552_v39 }
 0x41e   : > { %v2572_v49 = vpop.eup %2571  ;;  %v1258_v48 = vmul.f32 %v2570_v33, %v1212_v22  ;;  %v1557_v4 = vsel %vm1555_vm2, %v1556_v37, %v1554_v26  ;;  %v1223_v57 = vsel %vm1222_vm3, %v3506_v46, %v1221_v10  ;;  %vm1576_vm1 = vcmp.eq.f32.partialorder %v3577_v3, 0.0 }
 0x41f   : > { %2585 = vrsqrt.f32 %v1172_v40  ;;  %v1259_v50 = vmul.f32 %v2572_v49, %v1219_v7  ;;  %v2574_v20 = vpop.eup %2573  ;;  %v1226_v36 = vsel %vm1224_vm4, %v1225_v31, %v1223_v57  ;;  %v1584_v31 = vand.u32 2147483648, %v3579_v21 }
 0x420   : > { %v1501_v30 = vpop.xlane.xlu0 %1500  ;;  %1284 = vperm.xlu1 %2318, %v1258_v48   ;;  %2587 = vrsqrt.f32 %v3579_v21  ;;  %v1163_v58 = vpop.xlane.xlu1 %1162  ;;  %v1559_v9 = vmul.f32 %v2574_v20, %v3521_v42  ;;  %vm1243_vm2 = vcmp.eq.f32.partialorder %v3596_v53, inf  ;;  %vm1245_vm3 = vcmp.eq.f32.partialorder %v3596_v53, 0.0 }
 0x421   : > { %v2576_v32 = vpop.eup %2575  ;;  %2589 = vrsqrt.f32 %v1510_v45  ;;  %v1511_v63 = vmax.f32 %v1501_v30, 1e-08  ;;  %1289 = vperm.xlu0 %2317, %v1259_v50   ;;  %v1173_v8 = vmax.f32 %v1163_v58, 1e-08 }
 0x422   : > { %v2578_v11 = vpop.eup %2577  ;;  %v1596_v6 = vmul.f32 %v2576_v32, %v1550_v60  ;;  %2591 = vrsqrt.f32 %v3577_v3  ;;  %v1561_v49 = vsel %vm1560_vm5, %v3521_v42, %v1559_v9  ;;  %v1563_v60 = vand.u32 2147483648, %v3521_v42 }
 0x423   : > { %2593 = vrsqrt.f32 %v1511_v63  ;;  %v1566_v47 = vmul.f32 %v2578_v11, %v3532_v61  ;;  %v1570_v32 = vand.u32 2147483648, %v3532_v61 }
 0x424   : > { %1614 = vperm.xlu1 %2318, %v1596_v6   ;;  %v1165_v0 = vpop.xlane.xlu0 %1164  ;;  %2595 = vrsqrt.f32 %v1173_v8  ;;  %v1564_v26 = vsel %vm1562_vm7, %v1563_v60, %v1561_v49 }
 0x425   : > { %v2580_v15 = vpop.eup %2579  ;;  %v1174_v25 = vmax.f32 %v1165_v0, 1e-08  ;;  %v1167_v34 = vpop.xlane.xlu1 %1166  ;;  %2597 = vrsqrt.f32 %v3596_v53  ;;  %v1568_v45 = vsel %vm1567_vm6, %v3532_v61, %v1566_v47  ;;  %v1239_v61 = vand.u32 2147483648, %v3560_v2 }
 0x426   : > { %v2582_v41 = vpop.eup %2581  ;;  %v1597_v22 = vmul.f32 %v2580_v15, %v1557_v4  ;;  %v1175_v12 = vmax.f32 %v1167_v34, 1e-08  ;;  %v1571_v10 = vsel %vm1569_vm8, %v1570_v32, %v1568_v45  ;;  %v1232_v4 = vand.u32 2147483648, %v3549_v59 }
 0x427   : > { %v2584_v23 = vpop.eup %2583  ;;  %2599 = vrsqrt.f32 %v1174_v25  ;;  %v1228_v48 = vmul.f32 %v2582_v41, %v3549_v59 }
 0x428   : > { %v1505_v33 = vpop.xlane.xlu0 %1504  ;;  %1619 = vperm.xlu0 %2317, %v1597_v22   ;;  %v1235_v20 = vmul.f32 %v2584_v23, %v3560_v2 }
 0x429   : > { %v2586_v40 = vpop.eup %2585  ;;  %v1513_v5 = vmax.f32 %v1505_v33, 1e-08  ;;  %v1503_v39 = vpop.xlane.xlu1 %1502  ;;  %v1230_v11 = vsel %vm1229_vm9, %v3549_v59, %v1228_v48  ;;  %v1577_v59 = vand.u32 2147483648, %v3577_v3 }
 0x42a   : > { %v2588_v7 = vpop.eup %2587  ;;  %v1512_v50 = vmax.f32 %v1503_v39, 1e-08  ;;  %v1260_v46 = vmul.f32 %v2586_v40, %v1226_v36  ;;  %v1237_v37 = vsel %vm1236_vm10, %v3560_v2, %v1235_v20  ;;  %v1233_v34 = vsel %vm1231_vm11, %v1232_v4, %v1230_v11 }
 0x42b   : > { %v2590_v30 = vpop.eup %2589  ;;  %2601 = vrsqrt.f32 %v1513_v5  ;;  %v1580_v8 = vmul.f32 %v2588_v7, %v3579_v21  ;;  %v1240_v57 = vsel %vm1238_vm12, %v1239_v61, %v1237_v37 }
 0x42c   : > { %v2592_v58 = vpop.eup %2591  ;;  %2603 = vrsqrt.f32 %v1512_v50  ;;  %1294 = vperm.xlu1 %2318, %v1260_v46   ;;  %v1598_v42 = vmul.f32 %v2590_v30, %v1564_v26  ;;  %v2369_v50 = vpack.i.bf16 %v3493_v29, %v3484_v16 }
 0x42d   : > { %v2594_v63 = vpop.eup %2593  ;;  %2605 = vrsqrt.f32 %v1175_v12  ;;  %v1573_v9 = vmul.f32 %v2592_v58, %v3577_v3  ;;  %v1582_v22 = vsel %vm1581_vm13, %v3579_v21, %v1580_v8  ;;  %v1246_v21 = vand.u32 2147483648, %v3596_v53 }
 0x42e   : > { %v1599_v6 = vmul.f32 %v2594_v63, %v1571_v10  ;;  %v2596_v0 = vpop.eup %2595  ;;  %v1585_v36 = vsel %vm1583_vm15, %v1584_v31, %v1582_v22 }
 0x42f   : > { %v2598_v15 = vpop.eup %2597  ;;  %v1261_v47 = vmul.f32 %v2596_v0, %v1233_v34  ;;  %v1575_v23 = vsel %vm1574_vm14, %v3577_v3, %v1573_v9  ;;  %v2374_v3 = vpack.i.bf16 %v3536_v27, %v3534_v62 }
 0x430   : > { %1624 = vperm.xlu1 %2318, %v1598_v42   ;;  %1629 = vperm.xlu0 %2317, %v1599_v6   ;;  %v1242_v33 = vmul.f32 %v2598_v15, %v3596_v53  ;;  %v1578_v39 = vsel %vm1576_vm1, %v1577_v59, %v1575_v23 }
 0x431   : > { %v2600_v25 = vpop.eup %2599 }
 0x432   : > { %v1262_v41 = vmul.f32 %v2600_v25, %v1240_v57  ;;  %v1244_v45 = vsel %vm1243_vm2, %v3596_v53, %v1242_v33 }
 0x433   : > { %v1247_v7 = vsel %vm1245_vm3, %v1246_v21, %v1244_v45 }
 0x434   : > { %1299 = vperm.xlu1 %2318, %v1261_v47   ;;  %1304 = vperm.xlu0 %2317, %v1262_v41  }
 0x435   : > { %v2602_v2 = vpop.eup %2601 }
 0x436   : > { %v2604_v40 = vpop.eup %2603  ;;  %v1601_v5 = vmul.f32 %v2602_v2, %v1585_v36 }
 0x437   : > { %v1600_v49 = vmul.f32 %v2604_v40, %v1578_v39  ;;  %v2606_v48 = vpop.eup %2605 }
 0x438   : > { %1639 = vperm.xlu0 %2317, %v1601_v5   ;;  %v1263_v12 = vmul.f32 %v2606_v48, %v1247_v7 }
 0x439   : > { %1634 = vperm.xlu1 %2318, %v1600_v49  }
 0x43c   : > { %2375 = vperm.xlu0 %2317, %v2374_v3  }
 0x43d   : > { %1309 = vperm.xlu1 %2318, %v1263_v12  }
 0x441   : > { %2370 = vperm.xlu1 %2318, %v2369_v50  }
 0x442   : > { %2719 = shalt.err (!%p2716_p12)
}
 0x443   : > { %s2720_s22 = scalar_lea.hbm %s3659_s17, 512  ;;  %s2724_s27 = scalar_lea.hbm %s3852_s6, 2048 }
 0x444   : > { %p2721_p1 = scmp.ne.s32.totalorder %s3659_s17, %s2720_s22  ;;  %p2725_p10 = scmp.lt.u32.totalorder %s3659_s17, %s3852_s6 }
 0x445   : > { %p2726_p13 = scmp.lt.u32.totalorder %s2724_s27, %s2720_s22  ;;  %p2728_p3 = scmp.lt.u32.totalorder %s2720_s22, %s3659_s17 }
 0x446   : > { %p2722_p4 = pnand %p2721_p1, %p3038_p7 }
 0x447   : > { %p2727_p0 = por %p2726_p13, %p2725_p10 }
 0x448   : > { %p2723_p11 = pneg %p2722_p4 }
 0x449   : > { %p2729_p5 = por %p2728_p3, %p2727_p0 }
 0x44b   : > { %p2730_p9 = pnand %p2729_p5, %p2723_p11 }
 0x44d   : > { %2733 = shalt.err (!%p2730_p9)
}
 0x44e   : > { %s2852_s13 = smov 64   ;;  %s2853_s25 = smov 4   ;;  %v2351_v16 = vpop.permute.xlu0 %2350  ;;  %v2341_v29 = vpop.permute.xlu1 %2340 }
 0x44f   : > { %2237 = dma.vmem_to_hbm [thread:$0]  (%p3038_p7), %s3650_s10, 512, %s3659_s17, %s1739_s11, %s2852_s13, %s2852_s13, %s2853_s25   ;;  %v2343_v63 = vunpack.i.h.bf16 %v2341_v29  ;;  %v2342_v26 = vunpack.i.l.bf16 %v2341_v29  ;;  %v2353_v23 = vunpack.i.h.bf16 %v2351_v16  ;;  %v2352_v33 = vunpack.i.l.bf16 %v2351_v16 }
 0x450   : > { %s3703_s23 = scalar_lea.vmem [#allocation13], %s3096_s20  ;;  %s3708_s10 = scalar_lea.vmem [#allocation11], %s3096_s20 }
 0x451   : > { %s1743_s20 = sand.u32 1, %s2922_s9   ;;  %s1778_s17 = sshll.u32 %s3708_s10, 4  ;;  %s3753_s17 = int_to_ptr.vmem [resolvable:$true] %s1778_s17 }
 0x452   : > { %v2356_v62 = vpop.permute.xlu0 %2355  ;;  %v2346_v27 = vpop.permute.xlu1 %2345  ;;  %s3751_s15 = scalar_lea.hbm %s3853_s7, %s3653_s18  ;;  %s1794_s22 = sshll.u32 %s3703_s23, 4  ;;  %s3793_s22 = int_to_ptr.vmem [resolvable:$true] %s1794_s22 }
 0x453   : > { %v2348_v8 = vunpack.i.h.bf16 %v2346_v27  ;;  %v2347_v42 = vunpack.i.l.bf16 %v2346_v27  ;;  %v2357_v9 = vunpack.i.l.bf16 %v2356_v62  ;;  %v2358_v25 = vunpack.i.h.bf16 %v2356_v62  ;;  %s3764_s24 = scalar_lea.sflag [#allocation12], %s1743_s20  ;;  %s2734_s16 = scalar_lea.vmem %s3753_s17, 512 }
 0x454   : > { %p2735_p2 = scmp.ne.s32.totalorder %s3753_s17, %s2734_s16  ;;  %s2854_s27 = smov [#allocation11]  }
 0x455   : > { %s2738_s12 = sshll.u32 %s2854_s27, 4  ;;  %s2739_s12 = int_to_ptr.vmem [resolvable:$false] %s2738_s12 }
 0x456   : > { %v3688_v53 = vpop.permute.xlu0 %2365  ;;  %v2361_v46 = vpop.permute.xlu1 %2360  ;;  %p2736_p6 = pnand %p2735_p2, %p3038_p7  ;;  %s2740_s19 = scalar_lea.vmem %s2739_s12, 1024 }
 0x457   : > { %v2363_v48 = vunpack.i.h.bf16 %v2361_v46  ;;  %v2362_v21 = vunpack.i.l.bf16 %v2361_v46  ;;  %p2741_p12 = scmp.lt.s32.totalorder %s3753_s17, %s2739_s12  ;;  %p2742_p1 = scmp.lt.s32.totalorder %s2740_s19, %s2734_s16 }
 0x458   : > { %p2737_p8 = pneg %p2736_p6 }
 0x459   : > { %p2743_p4 = por %p2742_p1, %p2741_p12 }
 0x45b   : > { %p2744_p11 = pnand %p2743_p4, %p2737_p8 }
 0x496   : > { %v1275_v20 = vpop.permute.xlu0 %1274 }
 0x497   : > { %v1605_v30 = vpop.permute.xlu1 %1604  ;;  %v1312_v32 = vmul.f32 %v1275_v20, %v3324_v38 }
 0x498   : > { %v1642_v60 = vmul.f32 %v1605_v30, %v3327_v35  ;;  %v2368_v30 = vunpack.i.h.bf16 %v3688_v53 }
 0x499   : > { %v1360_v38 = vsel %vm390_vm0, %v2347_v42, %v1312_v32 }
 0x49a   : > { %v1610_v58 = vpop.permute.xlu0 %1609  ;;  %v1690_v37 = vsel %vm390_vm0, %v2342_v26, %v1642_v60  ;;  %v2367_v60 = vunpack.i.l.bf16 %v3688_v53 }
 0x49b   : > { %v1643_v10 = vmul.f32 %v1610_v58, %v3336_v44  ;;  %v1280_v11 = vpop.permute.xlu1 %1279 }
 0x49c   : > { %v1313_v6 = vmul.f32 %v1280_v11, %v3330_v13 }
 0x49d   : > { %v1691_v35 = vsel %vm390_vm0, %v2343_v63, %v1643_v10 }
 0x49e   : > { %v2161_v0 = vpack.c.bf16 %v1691_v35, %v1690_v37  ;;  %v1361_v4 = vsel %vm390_vm0, %v2348_v8, %v1313_v6 }
 0x49f   : > { %v2141_v44 = vpack.c.bf16 %v1361_v4, %v1360_v38  ;;  %v1285_v61 = vpop.permute.xlu1 %1284 }
 0x4a0   : > { %2162 = vst [vmem:[%s3703_s23] sm:$0xff] %v2161_v0   ;;  %v1314_v13 = vmul.f32 %v1285_v61, %v3350_v51  ;;  %v1290_v15 = vpop.permute.xlu0 %1289 }
 0x4a1   : > { %2142 = vst [vmem:[%s3708_s10] sm:$0xff] %v2141_v44   ;;  %v1315_v34 = vmul.f32 %v1290_v15, %v3357_v1 }
 0x4a2   : > { %v1362_v57 = vsel %vm390_vm0, %v2357_v9, %v1314_v13 }
 0x4a3   : > { %v1363_v47 = vsel %vm390_vm0, %v2358_v25, %v1315_v34  ;;  %v1615_v41 = vpop.permute.xlu1 %1614 }
 0x4a4   : > { %v2146_v22 = vpack.c.bf16 %v1363_v47, %v1362_v57  ;;  %v1644_v51 = vmul.f32 %v1615_v41, %v3353_v55 }
 0x4a6   : > { %2181 = vst [vmem:[%s3708_s10 + $0x8] sm:$0xff] %v2146_v22   ;;  %v1692_v2 = vsel %vm390_vm0, %v2352_v33, %v1644_v51 }
 0x4a7   : > { %v1620_v31 = vpop.permute.xlu0 %1619 }
 0x4a8   : > { %v1645_v59 = vmul.f32 %v1620_v31, %v3364_v19 }
 0x4aa   : > { %v1693_v1 = vsel %vm390_vm0, %v2353_v23, %v1645_v59 }
 0x4ab   : > { %v2166_v36 = vpack.c.bf16 %v1693_v1, %v1692_v2  ;;  %v1295_v40 = vpop.permute.xlu1 %1294 }
 0x4ac   : > { %v1316_v49 = vmul.f32 %v1295_v40, %v3380_v17 }
 0x4ad   : > { %2184 = vst [vmem:[%s3703_s23 + $0x8] sm:$0xff] %v2166_v36  }
 0x4ae   : > { %v1364_v3 = vsel %vm390_vm0, %v2362_v21, %v1316_v49 }
 0x4af   : > { %v1625_v5 = vpop.permute.xlu1 %1624  ;;  %v1630_v39 = vpop.permute.xlu0 %1629 }
 0x4b0   : > { %v1647_v10 = vmul.f32 %v1630_v39, %v3393_v54 }
 0x4b3   : > { %v1300_v55 = vpop.permute.xlu1 %1299  ;;  %v1305_v45 = vpop.permute.xlu0 %1304 }
 0x4b4   : > { %v1317_v19 = vmul.f32 %v1300_v55, %v3387_v24  ;;  %v1318_v17 = vmul.f32 %v1305_v45, %v3406_v43 }
 0x4b6   : > { %v1365_v7 = vsel %vm390_vm0, %v2363_v48, %v1317_v19 }
 0x4b7   : > { %v2151_v12 = vpack.c.bf16 %v1365_v7, %v1364_v3  ;;  %v1640_v50 = vpop.permute.xlu0 %1639 }
 0x4b8   : > { %v1635_v16 = vpop.permute.xlu1 %1634  ;;  %v1649_v62 = vmul.f32 %v1640_v50, %v3419_v56  ;;  %v1366_v56 = vsel %vm390_vm0, %v2367_v60, %v1318_v17 }
 0x4b9   : > { %2182 = vst [vmem:[%s3708_s10 + $0x10] sm:$0xff] %v2151_v12   ;;  %v1648_v27 = vmul.f32 %v1635_v16, %v3409_v28 }
 0x4bb   : > { %v2376_v29 = vpop.permute.xlu0 %2375 }
 0x4bc   : > { %v2378_v24 = vunpack.i.h.bf16 %v2376_v29  ;;  %v2377_v46 = vunpack.i.l.bf16 %v2376_v29  ;;  %v1310_v20 = vpop.permute.xlu1 %1309 }
 0x4bd   : > { %v1319_v32 = vmul.f32 %v1310_v20, %v3413_v52  ;;  %v1646_v52 = vmul.f32 %v1625_v5, %v3383_v18 }
 0x4be   : > { %v1697_v43 = vsel %vm390_vm0, %v2378_v24, %v1649_v62  ;;  %v1696_v28 = vsel %vm390_vm0, %v2377_v46, %v1648_v27 }
 0x4bf   : > { %v2176_v58 = vpack.c.bf16 %v1697_v43, %v1696_v28  ;;  %v1367_v63 = vsel %vm390_vm0, %v2368_v30, %v1319_v32 }
 0x4c0   : > { %v2156_v26 = vpack.c.bf16 %v1367_v63, %v1366_v56  ;;  %v2371_v53 = vpop.permute.xlu1 %2370 }
 0x4c1   : > { %2186 = vst [vmem:[%s3703_s23 + $0x18] sm:$0xff] %v2176_v58   ;;  %v2373_v11 = vunpack.i.h.bf16 %v2371_v53  ;;  %v2372_v8 = vunpack.i.l.bf16 %v2371_v53 }
 0x4c2   : > { %2183 = vst [vmem:[%s3708_s10 + $0x18] sm:$0xff] %v2156_v26  }
 0x4c3   : > { %v1694_v42 = vsel %vm390_vm0, %v2372_v8, %v1646_v52  ;;  %v1695_v6 = vsel %vm390_vm0, %v2373_v11, %v1647_v10 }
 0x4c4   : > { %2747 = shalt.err (!%p2744_p11)
}
 0x4c5   : > { %s2748_s10 = scalar_lea.hbm %s3751_s15, 512  ;;  %s2752_s11 = scalar_lea.hbm %s3853_s7, 2048 }
 0x4c6   : > { %p2749_p10 = scmp.ne.s32.totalorder %s3751_s15, %s2748_s10  ;;  %p2753_p3 = scmp.lt.u32.totalorder %s3751_s15, %s3853_s7 }
 0x4c7   : > { %p2754_p5 = scmp.lt.u32.totalorder %s2752_s11, %s2748_s10  ;;  %p2756_p2 = scmp.lt.u32.totalorder %s2748_s10, %s3751_s15 }
 0x4c8   : > { %p2750_p13 = pnand %p2749_p10, %p3038_p7 }
 0x4c9   : > { %p2755_p9 = por %p2754_p5, %p2753_p3 }
 0x4ca   : > { %p2751_p0 = pneg %p2750_p13 }
 0x4cb   : > { %p2757_p6 = por %p2756_p2, %p2755_p9 }
 0x4cd   : > { %p2758_p8 = pnand %p2757_p6, %p2751_p0 }
 0x4cf   : > { %2761 = shalt.err (!%p2758_p8)
}
 0x4d0   : > { %2238 = dma.vmem_to_hbm [thread:$0]  (%p3038_p7), %s3753_s17, 512, %s3751_s15, %s3764_s24, %s2852_s13, %s2852_s13, %s2853_s25   ;;  %v2171_v14 = vpack.c.bf16 %v1695_v6, %v1694_v42 }
 0x4d1   : > { %s3799_s10 = scalar_lea.hbm %s3854_s8, %s3653_s18  ;;  %s2762_s20 = scalar_lea.vmem %s3793_s22, 512 }
 0x4d2   : > { %2185 = vst [vmem:[%s3703_s23 + $0x10] sm:$0xff] %v2171_v14   ;;  %p2763_p12 = scmp.ne.s32.totalorder %s3793_s22, %s2762_s20  ;;  %s2855_s9 = smov [#allocation13]  }
 0x4d3   : > { %s2766_s17 = sshll.u32 %s2855_s9, 4  ;;  %s2767_s17 = int_to_ptr.vmem [resolvable:$false] %s2766_s17 }
 0x4d4   : > { %p2764_p1 = pnand %p2763_p12, %p3038_p7  ;;  %s2768_s15 = scalar_lea.vmem %s2767_s17, 1024 }
 0x4d5   : > { %p2769_p11 = scmp.lt.s32.totalorder %s3793_s22, %s2767_s17  ;;  %p2770_p10 = scmp.lt.s32.totalorder %s2768_s15, %s2762_s20 }
 0x4d6   : > { %p2765_p4 = pneg %p2764_p1 }
 0x4d7   : > { %p2771_p13 = por %p2770_p10, %p2769_p11 }
 0x4d9   : > { %p2772_p0 = pnand %p2771_p13, %p2765_p4 }
 0x4db   : > { %2775 = shalt.err (!%p2772_p0)
}
 0x4dc   : > { %s2776_s18 = scalar_lea.hbm %s3799_s10, 512  ;;  %s2780_s27 = scalar_lea.hbm %s3854_s8, 2048 }
 0x4dd   : > { %p2777_p3 = scmp.ne.s32.totalorder %s3799_s10, %s2776_s18  ;;  %p2781_p2 = scmp.lt.u32.totalorder %s3799_s10, %s3854_s8 }
 0x4de   : > { %p2782_p6 = scmp.lt.u32.totalorder %s2780_s27, %s2776_s18  ;;  %p2784_p12 = scmp.lt.u32.totalorder %s2776_s18, %s3799_s10 }
 0x4df   : > { %p2778_p5 = pnand %p2777_p3, %p3038_p7 }
 0x4e0   : > { %p2783_p8 = por %p2782_p6, %p2781_p2 }
 0x4e1   : > { %p2779_p9 = pneg %p2778_p5 }
 0x4e2   : > { %p2785_p1 = por %p2784_p12, %p2783_p8 }
 0x4e4   : > { %p2786_p4 = pnand %p2785_p1, %p2779_p9 }
 0x4e6   : > { %2789 = shalt.err (!%p2786_p4)
}
 0x4e7   : > { %2239 = dma.vmem_to_hbm [thread:$0]  (%p3038_p7), %s3793_s22, 512, %s3799_s10, %s3764_s24, %s2852_s13, %s2852_s13, %s2853_s25  }
 0x4e8 PF: > { %s3877_s19 = sld [smem:[#allocation19_spill]]  ;;  %s3878_s20 = sld [smem:[#allocation20_spill]] }
 0x4e9   : > { %p2274_p11 = scmp.ge.s32.totalorder %s2840_s30, 2 }
 0x4ee   : > { %s1809_s9 = sand.u32 1, %s3877_s19   ;;  %p3879_p10 = scmp.ne.s32.totalorder %s3878_s20, 0 }
 0x4ef   : > { %s1810_s17 = scalar_lea.sflag [#allocation4], %s1809_s9 }
 0x4f0   : > { %p2258_p13 = pnand %p2274_p11, %p3879_p10 }
 0x4f2   : > { %2819 = dma.done.wait (!%p2258_p13), %s1810_s17, 512  }
 0x4f3   : > { %2821 = vsyncadd (!%p2258_p13), %s1810_s17, 4294966784  ;;  %s3880_s14 = sadd.s32 4294967294, %s2840_s30  }
 0x4f4   : > { %s1818_s15 = sand.u32 1, %s3880_s14  }
 0x4f5   : > { %s1819_s18 = scalar_lea.sflag [#allocation12], %s1818_s15 }
 0x4f6   : > { %2823 = dma.done.wait (!%p2258_p13), %s1819_s18, 1024  }
 0x4f7   : > { %2825 = vsyncadd (!%p2258_p13), %s1819_s18, 4294966272  ;;  %p27_p7 = scmp.ge.s32.totalorder %s3024_s21, 6   ;;  %s3881_s27 = smov %s2832_s28 }
 0x4f8   : > { %s3882_s28 = smov %s2836_s29  ;;  %s3883_s29 = smov %s3034_s26 }
 0x4f9   : > { %s3884_s30 = smov %s3024_s21  ;;  %29 = sbr.rel (!%p27_p7) target bundleno = 9 (0x9), region = 134 }
 0x500   :  { %1833 = vsyncpa [#allocation3], 1 }
 0x501   :  { %1835 = vsyncpa [#allocation3 + $0x1], 1 }
 0x502   :  { %1836 = vsyncpa [#allocation8], 1 }
 0x503   :  { %1837 = vsyncpa [#allocation4], 1 }
 0x504   :  { %1839 = vsyncpa [#allocation4 + $0x1], 1 }
 0x505   :  { %1840 = vsyncpa [#allocation12], 1 }
 0x506   :  { %1842 = vsyncpa [#allocation12 + $0x1], 1 }
 0x507   :  { %1843 = vsyncpa [#allocation5], 1 }
 0x508   :  { %1845 = vsyncpa [#allocation5 + $0x1], 1 }

</bundles_post_ra>
